<compile_context>
chip_gen: v7x
topology: tpu7x:2x2x1
jax: 0.10.0
libtpu: 0.0.40
codegen_flags: <defaults>
</compile_context>

<pallas_src>
import functools
import math

import jax
import jax.numpy as jnp
from jax.experimental import pallas as pl
from jax.experimental.pallas import tpu as pltpu

HIDDEN = 256      # width of l1 / l2
HEAD_PAD = 128    # lane-padded width of the l3 head (2*action_dim <= 128)


def _round_up(x, m):
    return ((x + m - 1) // m) * m


def _choose_batch_tile(batch, block_batch):
    """Pick the batch tile: as few grid steps as possible, >=256 rows when the
    batch allows (256-tall MXU on v6e/v7x), and an even step count when there
    is more than one step so both v7x TensorCores get work."""
    align = 256 if batch >= 256 else 8
    tb = min(_round_up(max(block_batch, align), align), _round_up(batch, align))
    steps = -(-batch // tb)
    if steps > 1 and steps % 2 == 1:
        tb_even = _round_up(-(-batch // (steps + 1)), align)
        if tb_even >= align and (-(-batch // tb_even)) % 2 == 0:
            tb = tb_even
            steps = -(-batch // tb)
    return tb, steps * tb


def _actor_td3_kernel(x_ref, w1_ref, b1_ref, w2_ref, b2_ref, w3_ref, b3_ref,
                      out_ref, *, max_action, action_dim):
    """Fused 3-layer MLP with a lane-dense combined (mean|std|pad) output tile."""
    tb, state_dim = x_ref.shape
    hidden = w1_ref.shape[1]

    x = x_ref[...]                                   # (TB, state_dim) f32

    # ---- Layer 1 on the VPU -------------------------------------------------
    # K = state_dim is tiny (2 for MountainCar); an MXU matmul would be almost
    # entirely padding and would force a wrapper-side zero-pad of the state.
    # `state_dim` rank-1 updates keep the raw state as the kernel input and
    # fold b1 into the accumulator init for free.
    a = jnp.broadcast_to(b1_ref[...], (tb, hidden))
    for k in range(state_dim):                       # static unroll, tiny
        a = a + x[:, k:k + 1] * w1_ref[k:k + 1, :]
    a = jnp.maximum(a, 0.0)

    # ---- Layer 2 on the MXU (bf16 operands, f32 accumulation) ---------------
    a = jnp.dot(a.astype(w2_ref.dtype), w2_ref[...],
                preferred_element_type=jnp.float32) + b2_ref[...]
    a = jnp.maximum(a, 0.0)

    # ---- Layer 3 head (padded to a full 128-lane tile) ----------------------
    h = jnp.dot(a.astype(w3_ref.dtype), w3_ref[...],
                preferred_element_type=jnp.float32) + b3_ref[...]

    # Per-lane head select: lanes [0, action_dim) -> max_action * tanh (mean),
    # lanes [action_dim, ...) -> softplus + 1e-9 (std).  Padding lanes hold
    # finite garbage and are sliced away in the wrapper.
    lane = jax.lax.broadcasted_iota(jnp.int32, h.shape, dimension=1)
    mean_val = max_action * jnp.tanh(h)
    # Numerically-stable softplus: max(x, 0) + log1p(exp(-|x|))
    std_val = jnp.maximum(h, 0.0) + jnp.log1p(jnp.exp(-jnp.abs(h))) + 1e-9
    out_ref[...] = jnp.where(lane < action_dim, mean_val, std_val)


def actor_td3_forward(state, params, *, max_action, action_dim, block_batch=1024):
    """Runs the fused Actor_TD3 forward pass with a batch-tiled Pallas kernel."""
    w1, b1, w2, b2, w3, b3 = params
    batch, state_dim = state.shape
    hidden = w2.shape[0]
    head_pad = w3.shape[1]

    # Guard against un-padded / mismatched params (silent wrong slices otherwise).
    assert w1.shape[0] == state_dim, "w1 must be (state_dim, hidden)"
    assert 2 * action_dim <= head_pad, "w3/b3 must be lane-padded to >= 2*action_dim"
    assert head_pad % 128 == 0, "l3 head must be lane-dense (multiple of 128)"

    tb, padded_batch = _choose_batch_tile(batch, block_batch)

    x = state.astype(jnp.float32)
    if padded_batch != batch:
        # Pad only the batch dimension, and only when required.
        x = jnp.pad(x, ((0, padded_batch - batch), (0, 0)))

    kernel = functools.partial(
        _actor_td3_kernel, max_action=max_action, action_dim=action_dim
    )

    out = pl.pallas_call(
        kernel,
        out_shape=jax.ShapeDtypeStruct((padded_batch, head_pad), jnp.float32),
        grid_spec=pltpu.PrefetchScalarGridSpec(
            num_scalar_prefetch=0,
            grid=(padded_batch // tb,),
            in_specs=[
                pl.BlockSpec((tb, state_dim), lambda i: (i, 0)),       # raw state tile
                pl.BlockSpec((state_dim, hidden), lambda i: (0, 0)),   # w1 (resident)
                pl.BlockSpec((1, hidden), lambda i: (0, 0)),           # b1
                pl.BlockSpec((hidden, hidden), lambda i: (0, 0)),      # w2
                pl.BlockSpec((1, hidden), lambda i: (0, 0)),           # b2
                pl.BlockSpec((hidden, head_pad), lambda i: (0, 0)),    # w3 (padded)
                pl.BlockSpec((1, head_pad), lambda i: (0, 0)),         # b3 (padded)
            ],
            out_specs=pl.BlockSpec((tb, head_pad), lambda i: (i, 0)),  # lane-dense
        ),
        compiler_params=pltpu.CompilerParams(
            dimension_semantics=("parallel",),
            # Only needed when callers raise block_batch far past the default
            # (v5e scoped-VMEM default is 16 MiB); harmless otherwise.
            vmem_limit_bytes=(48 << 20) if tb > 2048 else None,
        ),
    )(x, w1, b1, w2, b2, w3, b3)

    mean = out[:batch, :action_dim]
    std = out[:batch, action_dim:2 * action_dim]
    return mean, std


def init_actor_td3_params(key, state_dim, action_dim, hidden=HIDDEN,
                          compute_dtype=jnp.bfloat16):
    """PyTorch-nn.Linear-style init with TPU-friendly layout.

    Weights are (in_features, out_features) so the kernel computes x @ W + b.
    w1/b1 stay f32 (layer 1 runs on the VPU with the raw state); w3/b3 are
    zero-padded to HEAD_PAD output lanes; w2/w3 are cast to `compute_dtype`
    (bf16) for the MXU.  Note: bf16 weight storage means results differ from a
    true f32 PyTorch Actor_TD3 beyond ~1e-3 relative (fine for RL inference).
    """
    assert 2 * action_dim <= HEAD_PAD
    ks = jax.random.split(key, 6)

    def lin(kw, kb, fan_in, fan_out):
        bound = 1.0 / math.sqrt(fan_in)
        w = jax.random.uniform(kw, (fan_in, fan_out), jnp.float32, -bound, bound)
        b = jax.random.uniform(kb, (1, fan_out), jnp.float32, -bound, bound)
        return w, b

    w1, b1 = lin(ks[0], ks[1], state_dim, hidden)
    w2, b2 = lin(ks[2], ks[3], hidden, hidden)
    w3, b3 = lin(ks[4], ks[5], hidden, 2 * action_dim)

    # Lane-pad the layer-3 head to a full 128-lane tile (zero columns).
    w3p = jnp.zeros((hidden, HEAD_PAD), jnp.float32).at[:, :2 * action_dim].set(w3)
    b3p = jnp.zeros((1, HEAD_PAD), jnp.float32).at[:, :2 * action_dim].set(b3)

    return (w1, b1,
            w2.astype(compute_dtype), b2,
            w3p.astype(compute_dtype), b3p)


def actor_td3_reference(state, params, *, max_action, action_dim):
    """Pure-JAX reference using the same (padded, bf16) params as the kernel."""
    w1, b1, w2, b2, w3, b3 = params
    x = state.astype(jnp.float32)
    a = jax.nn.relu(jnp.dot(x, w1) + b1)
    a = jax.nn.relu(jnp.dot(a.astype(w2.dtype), w2,
                            preferred_element_type=jnp.float32) + b2)
    h = jnp.dot(a.astype(w3.dtype), w3,
                preferred_element_type=jnp.float32) + b3
    mean = max_action * jnp.tanh(h[:, :action_dim])
    std = jax.nn.softplus(h[:, action_dim:2 * action_dim]) + 1e-9
    return mean, std


# TODO(synk): Actor_TD3.reset() (parameter re-initialization) is host-side; it is
# covered by calling init_actor_td3_params again rather than by a kernel.


if __name__ == "__main__":
    # Mountain-Car-like sizes: state_dim=2, action_dim=1, max_action=1.0.
    state_dim = 2
    action_dim = 1
    max_action = 1.0

    key = jax.random.PRNGKey(0)
    k_params, k_state = jax.random.split(key)
    params = init_actor_td3_params(k_params, state_dim, action_dim)

    def check(batch, block_batch):
        ks = jax.random.fold_in(k_state, batch)
        state = jax.random.normal(ks, (batch, state_dim), dtype=jnp.float32)
        mean, std = actor_td3_forward(
            state, params, max_action=max_action, action_dim=action_dim,
            block_batch=block_batch)
        jax.block_until_ready((mean, std))
        mean_ref, std_ref = actor_td3_reference(
            state, params, max_action=max_action, action_dim=action_dim)
        assert mean.shape == (batch, action_dim) and std.shape == (batch, action_dim)
        assert jnp.allclose(mean, mean_ref, atol=2e-3, rtol=2e-3)
        assert jnp.allclose(std, std_ref, atol=2e-3, rtol=2e-3)
        assert bool(jnp.all(std > 0.0))

    check(256, 1024)   # aligned batch: single 256-row tile, no wrapper padding
    check(40, 1024)    # unaligned small batch: batch-only pad, single step
    check(512, 256)    # two 256-row steps: exercises pipelining / v7x megacore

    print("KERNEL_OK")
</pallas_src>

<mosaic_0001>
module attributes {stable_mosaic.version = 11 : i64} {
  func.func @_actor_td3_kernel(%arg0: i32, %arg1: memref<256x2xf32, #tpu.memory_space<vmem>>, %arg2: memref<2x256xf32, #tpu.memory_space<vmem>>, %arg3: memref<1x256xf32, #tpu.memory_space<vmem>>, %arg4: memref<256x256xbf16, #tpu.memory_space<vmem>>, %arg5: memref<1x256xf32, #tpu.memory_space<vmem>>, %arg6: memref<256x128xbf16, #tpu.memory_space<vmem>>, %arg7: memref<1x128xf32, #tpu.memory_space<vmem>>, %arg8: memref<256x128xf32, #tpu.memory_space<vmem>>) attributes {dimension_semantics = [#tpu.dimension_semantics<parallel>], iteration_bounds = array<i64: 1>, scalar_prefetch = 0 : i64, scratch_operands = 0 : i64, tpu.core_type = #tpu.core_type<tc>, window_params = [{transform_indices = @transform_0, window_bounds = array<i64: 256, 2>}, {pipeline_mode = #tpu.pipeline_mode<synchronous>, transform_indices = @transform_1, window_bounds = array<i64: 2, 256>}, {pipeline_mode = #tpu.pipeline_mode<synchronous>, transform_indices = @transform_2, window_bounds = array<i64: 1, 256>}, {pipeline_mode = #tpu.pipeline_mode<synchronous>, transform_indices = @transform_3, window_bounds = array<i64: 256, 256>}, {pipeline_mode = #tpu.pipeline_mode<synchronous>, transform_indices = @transform_4, window_bounds = array<i64: 1, 256>}, {pipeline_mode = #tpu.pipeline_mode<synchronous>, transform_indices = @transform_5, window_bounds = array<i64: 256, 128>}, {pipeline_mode = #tpu.pipeline_mode<synchronous>, transform_indices = @transform_6, window_bounds = array<i64: 1, 128>}, {transform_indices = @transform_7, window_bounds = array<i64: 256, 128>}]} {
    %c0 = arith.constant 0 : index
    %c0_0 = arith.constant 0 : index
    %0 = vector.load %arg1[%c0, %c0_0] : memref<256x2xf32, #tpu.memory_space<vmem>>, vector<256x2xf32>
    %c0_1 = arith.constant 0 : index
    %c0_2 = arith.constant 0 : index
    %1 = vector.load %arg3[%c0_1, %c0_2] : memref<1x256xf32, #tpu.memory_space<vmem>>, vector<1x256xf32>
    %2 = vector.shape_cast %1 : vector<1x256xf32> to vector<1x256xf32>
    %3 = vector.broadcast %2 : vector<1x256xf32> to vector<256x256xf32>
    %4 = vector.extract_strided_slice %0 {offsets = [0, 0], sizes = [256, 1], strides = [1, 1]} : vector<256x2xf32> to vector<256x1xf32>
    %c0_3 = arith.constant 0 : index
    %c0_4 = arith.constant 0 : index
    %5 = vector.load %arg2[%c0_3, %c0_4] : memref<2x256xf32, #tpu.memory_space<vmem>>, vector<1x256xf32>
    %6 = vector.broadcast %4 : vector<256x1xf32> to vector<256x256xf32>
    %7 = vector.broadcast %5 : vector<1x256xf32> to vector<256x256xf32>
    %8 = arith.mulf %6, %7 : vector<256x256xf32>
    %9 = arith.addf %3, %8 : vector<256x256xf32>
    %10 = vector.extract_strided_slice %0 {offsets = [0, 1], sizes = [256, 1], strides = [1, 1]} : vector<256x2xf32> to vector<256x1xf32>
    %c1 = arith.constant 1 : index
    %c0_5 = arith.constant 0 : index
    %11 = vector.load %arg2[%c1, %c0_5] : memref<2x256xf32, #tpu.memory_space<vmem>>, vector<1x256xf32>
    %12 = vector.broadcast %10 : vector<256x1xf32> to vector<256x256xf32>
    %13 = vector.broadcast %11 : vector<1x256xf32> to vector<256x256xf32>
    %14 = arith.mulf %12, %13 : vector<256x256xf32>
    %15 = arith.addf %9, %14 : vector<256x256xf32>
    %cst = arith.constant 0.000000e+00 : f32
    %16 = vector.broadcast %cst : f32 to vector<256x256xf32>
    %17 = arith.maximumf %15, %16 : vector<256x256xf32>
    %18 = arith.truncf %17 : vector<256x256xf32> to vector<256x256xbf16>
    %c0_6 = arith.constant 0 : index
    %c0_7 = arith.constant 0 : index
    %19 = vector.load %arg4[%c0_6, %c0_7] : memref<256x256xbf16, #tpu.memory_space<vmem>>, vector<256x256xbf16>
    %cst_8 = arith.constant dense<0.000000e+00> : vector<256x256xf32>
    %20 = tpu.matmul %18, %19, %cst_8 {dimension_numbers = #tpu.dot_dimension_numbers<[1], [0], [0], [1], [0, 0, 1, 1], [], []>} : vector<256x256xbf16>, vector<256x256xbf16>, vector<256x256xf32> -> vector<256x256xf32>
    %c0_9 = arith.constant 0 : index
    %c0_10 = arith.constant 0 : index
    %21 = vector.load %arg5[%c0_9, %c0_10] : memref<1x256xf32, #tpu.memory_space<vmem>>, vector<1x256xf32>
    %22 = vector.broadcast %21 : vector<1x256xf32> to vector<256x256xf32>
    %23 = arith.addf %20, %22 : vector<256x256xf32>
    %cst_11 = arith.constant 0.000000e+00 : f32
    %24 = vector.broadcast %cst_11 : f32 to vector<256x256xf32>
    %25 = arith.maximumf %23, %24 : vector<256x256xf32>
    %26 = arith.truncf %25 : vector<256x256xf32> to vector<256x256xbf16>
    %c0_12 = arith.constant 0 : index
    %c0_13 = arith.constant 0 : index
    %27 = vector.load %arg6[%c0_12, %c0_13] : memref<256x128xbf16, #tpu.memory_space<vmem>>, vector<256x128xbf16>
    %cst_14 = arith.constant dense<0.000000e+00> : vector<256x128xf32>
    %28 = tpu.matmul %26, %27, %cst_14 {dimension_numbers = #tpu.dot_dimension_numbers<[1], [0], [0], [1], [0, 0, 1, 1], [], []>} : vector<256x256xbf16>, vector<256x128xbf16>, vector<256x128xf32> -> vector<256x128xf32>
    %c0_15 = arith.constant 0 : index
    %c0_16 = arith.constant 0 : index
    %29 = vector.load %arg7[%c0_15, %c0_16] : memref<1x128xf32, #tpu.memory_space<vmem>>, vector<1x128xf32>
    %30 = vector.broadcast %29 : vector<1x128xf32> to vector<256x128xf32>
    %31 = arith.addf %28, %30 : vector<256x128xf32>
    %32 = tpu.iota {dimensions = array<i32: 1>} : vector<256x128xi32>
    %33 = math.tanh %31 : vector<256x128xf32>
    %cst_17 = arith.constant 1.000000e+00 : f32
    %34 = vector.broadcast %cst_17 : f32 to vector<256x128xf32>
    %35 = arith.mulf %34, %33 : vector<256x128xf32>
    %cst_18 = arith.constant 0.000000e+00 : f32
    %36 = vector.broadcast %cst_18 : f32 to vector<256x128xf32>
    %37 = arith.maximumf %31, %36 : vector<256x128xf32>
    %38 = math.absf %31 : vector<256x128xf32>
    %cst_19 = arith.constant 0.000000e+00 : f32
    %39 = vector.broadcast %cst_19 : f32 to vector<256x128xf32>
    %40 = arith.subf %39, %38 : vector<256x128xf32>
    %41 = math.exp %40 : vector<256x128xf32>
    %42 = math.log1p %41 : vector<256x128xf32>
    %43 = arith.addf %37, %42 : vector<256x128xf32>
    %cst_20 = arith.constant 9.99999971E-10 : f32
    %44 = vector.broadcast %cst_20 : f32 to vector<256x128xf32>
    %45 = arith.addf %43, %44 : vector<256x128xf32>
    %c1_i32 = arith.constant 1 : i32
    %46 = vector.broadcast %c1_i32 : i32 to vector<256x128xi32>
    %47 = arith.cmpi slt, %32, %46 : vector<256x128xi32>
    %48 = arith.select %47, %35, %45 : vector<256x128xi1>, vector<256x128xf32>
    %c0_21 = arith.constant 0 : index
    %c0_22 = arith.constant 0 : index
    %49 = vector.load %arg8[%c0_21, %c0_22] : memref<256x128xf32, #tpu.memory_space<vmem>>, vector<256x128xf32>
    tpu.vector_store %arg8[%c0_21, %c0_22], %48 {strides = array<i32>} : memref<256x128xf32, #tpu.memory_space<vmem>>, vector<256x128xf32>,
    return
  }
  func.func @transform_0(%arg0: i32) -> (i32, i32) {
    %c0_i32 = arith.constant 0 : i32
    %c0_i32_0 = arith.constant 0 : i32
    return %arg0, %c0_i32 : i32, i32
  }
  func.func @transform_1(%arg0: i32) -> (i32, i32) {
    %c0_i32 = arith.constant 0 : i32
    %c0_i32_0 = arith.constant 0 : i32
    %c0_i32_1 = arith.constant 0 : i32
    return %c0_i32, %c0_i32_0 : i32, i32
  }
  func.func @transform_2(%arg0: i32) -> (i32, i32) {
    %c0_i32 = arith.constant 0 : i32
    %c0_i32_0 = arith.constant 0 : i32
    %c0_i32_1 = arith.constant 0 : i32
    return %c0_i32, %c0_i32_0 : i32, i32
  }
  func.func @transform_3(%arg0: i32) -> (i32, i32) {
    %c0_i32 = arith.constant 0 : i32
    %c0_i32_0 = arith.constant 0 : i32
    %c0_i32_1 = arith.constant 0 : i32
    return %c0_i32, %c0_i32_0 : i32, i32
  }
  func.func @transform_4(%arg0: i32) -> (i32, i32) {
    %c0_i32 = arith.constant 0 : i32
    %c0_i32_0 = arith.constant 0 : i32
    %c0_i32_1 = arith.constant 0 : i32
    return %c0_i32, %c0_i32_0 : i32, i32
  }
  func.func @transform_5(%arg0: i32) -> (i32, i32) {
    %c0_i32 = arith.constant 0 : i32
    %c0_i32_0 = arith.constant 0 : i32
    %c0_i32_1 = arith.constant 0 : i32
    return %c0_i32, %c0_i32_0 : i32, i32
  }
  func.func @transform_6(%arg0: i32) -> (i32, i32) {
    %c0_i32 = arith.constant 0 : i32
    %c0_i32_0 = arith.constant 0 : i32
    %c0_i32_1 = arith.constant 0 : i32
    return %c0_i32, %c0_i32_0 : i32, i32
  }
  func.func @transform_7(%arg0: i32) -> (i32, i32) {
    %c0_i32 = arith.constant 0 : i32
    %c0_i32_0 = arith.constant 0 : i32
    return %arg0, %c0_i32 : i32, i32
  }
}

</mosaic_0001>

<bundles_post_ra>
// kernel: tpu_custom_call.1
= control target key start
LH: loop header
LB: loop body
LE: loop exit
PB: predicated region body
PF: predicated region fallthrough
CT: control target
= control target key end

     0   :  { %12 = vsyncpa [#allocation3], 0  ;;  %s3714_s0 = inlined_call_operand.vmem [shape: f32[256,2], index: 0, kind: input, shape index: {}]   ;;  %s3715_s1 = inlined_call_operand.vmem [shape: f32[2,256], index: 1, kind: input, shape index: {}]   ;;  %s3716_s2 = inlined_call_operand.vmem [shape: f32[1,256], index: 2, kind: input, shape index: {}]   ;;  %s3717_s3 = inlined_call_operand.vmem [shape: bf16[256,256], index: 3, kind: input, shape index: {}]   ;;  %s3718_s4 = inlined_call_operand.vmem [shape: f32[1,256], index: 4, kind: input, shape index: {}]   ;;  %s3719_s5 = inlined_call_operand.hbm [shape: bf16[256,128], index: 5, kind: input, shape index: {}]   ;;  %s3720_s6 = inlined_call_operand.vmem [shape: f32[1,128], index: 6, kind: input, shape index: {}]   ;;  %s3721_s7 = inlined_call_operand.hbm [shape: f32[256,128], index: 7, kind: output, shape index: {}]  }
   0x1   :  { %13 = vsyncpa [#allocation4], 0  ;;  %s2684_s24 = smov [#allocation2]   ;;  %s2636_s28 = scalar_lea.hbm %s3719_s5, 2048 }
   0x2   :  { %s29_s25 = sshll.u32 %s2684_s24, 4  ;;  %p2637_p0 = scmp.ne.s32.totalorder %s3719_s5, %s2636_s28  ;;  %s30_s25 = int_to_ptr.vmem [resolvable:$true] %s29_s25 }
   0x3   :  { %p2640_p1 = scmp.lt.u32.totalorder %s2636_s28, %s3719_s5 }
   0x5   :  { %p2642_p2 = pnand %p2640_p1, %p2637_p0 }
   0x7   :  { %2645 = shalt.err (!%p2642_p2)
}
   0x8   :  { %s2646_s10 = scalar_lea.vmem %s30_s25, 2048  ;;  %p2651_p4 = scmp.lt.s32.totalorder %s30_s25, %s30_s25 }
   0x9   :  { %p2647_p3 = scmp.ne.s32.totalorder %s30_s25, %s2646_s10  ;;  %p2652_p5 = scmp.lt.s32.totalorder %s2646_s10, %s2646_s10 }
   0xb   :  { %p2653_p6 = por %p2652_p5, %p2651_p4 }
   0xd   :  { %p2654_p7 = pnand %p2653_p6, %p2647_p3 }
   0xf   :  { %2657 = shalt.err (!%p2654_p7)
}
  0x10   :  { %s2685_s11 = smov 64   ;;  %s2686_s12 = smov 4  }
  0x11   :  { %35 = dma.hbm_to_vmem [thread:$0]  %s3719_s5, 2048, %s30_s25, [#allocation3], %s2685_s11, %s2685_s11, %s2686_s12  }
  0x12   :  { %2680 = dma.done.wait [#allocation3], 2048  }
  0x13   :  { %2681 = vsyncadd [#allocation3], 4294965248  ;;  %v2687_v0 = vmov 1   ;;  %v2688_v1 = vmov 0   ;;  %v42_v2 = vld [vmem:[%s3714_s0] sm:$0xff]  ;;  %v43_v3 = vld [vmem:[%s3714_s0 + $0x8] sm:$0xff]  ;;  %v76_v61 = vlaneseq }
  0x14   :  { %2339 = vset.pattern.permute.xlu1 %v2687_v0  ;;  %2338 = vset.pattern.permute.xlu0 %v2688_v1  ;;  %v2379_v4 = vld [vmem:[%s3717_s3 + $0x4] ss:$8 sps:$4 sm:$0xff]   ;;  %v44_v5 = vld [vmem:[%s3714_s0 + $0x10] sm:$0xff]  ;;  %v2381_v6 = vld [vmem:[%s3717_s3] ss:$8 sps:$4 sm:$0xff]  }
  0x15   :  { %389 = vperm.xlu1 %2339, %v42_v2   ;;  %89 = vperm.xlu0 %2338, %v42_v2   ;;  %v45_v7 = vld [vmem:[%s3714_s0 + $0x18] sm:$0xff]  ;;  %v2385_v10 = vld [vmem:[%s3717_s3 + $0x24] ss:$8 sps:$4 sm:$0xff]   ;;  %v2387_v12 = vld [vmem:[%s3717_s3 + $0x20] ss:$8 sps:$4 sm:$0xff]   ;;  %v77_v62 = vshrl.u32 %v76_v61, 7 }
  0x16   :  { %955 = vmatprep.subr.bf16.mxu0 %v2379_v4  ;;  %v2382_v8 = vld [vmem:[%s3717_s3 + $0x14] ss:$8 sps:$4 sm:$0xff]   ;;  %v2384_v9 = vld [vmem:[%s3717_s3 + $0x10] ss:$8 sps:$4 sm:$0xff]   ;;  %v47_v11 = vld [vmem:[%s3714_s0 + $0x28] sm:$0xff] }
  0x17   :  { %956 = vmatpush1.bf16.msra.mxu0 %v2381_v6  ;;  %v2388_v13 = vld [vmem:[%s3717_s3 + $0x34] ss:$8 sps:$4 sm:$0xff]   ;;  %v2390_v14 = vld [vmem:[%s3717_s3 + $0x30] ss:$8 sps:$4 sm:$0xff]   ;;  %v46_v15 = vld [vmem:[%s3714_s0 + $0x20] sm:$0xff]  ;;  %v2963_v63 = vsub.s32 0, %v77_v62 }
  0x18   :  { %957 = vmatprep.subr.bf16.mxu0 %v2382_v8  ;;  %v2391_v16 = vld [vmem:[%s3717_s3 + $0x44] ss:$8 sps:$4 sm:$0xff]   ;;  %v48_v17 = vld [vmem:[%s3714_s0 + $0x30] sm:$0xff]  ;;  %v2393_v18 = vld [vmem:[%s3717_s3 + $0x40] ss:$8 sps:$4 sm:$0xff]   ;;  %v2965_v2 = vsub.s32 1, %v77_v62 }
  0x19   :  { %393 = vperm.xlu1 %2339, %v43_v3   ;;  %94 = vperm.xlu0 %2338, %v43_v3   ;;  %v2394_v19 = vld [vmem:[%s3717_s3 + $0x54] ss:$8 sps:$4 sm:$0xff]   ;;  %v2396_v20 = vld [vmem:[%s3717_s3 + $0x50] ss:$8 sps:$4 sm:$0xff]   ;;  %v2397_v21 = vld [vmem:[%s3717_s3 + $0x64] ss:$8 sps:$4 sm:$0xff]  }
  0x1a   :  { %v51_v22 = vld [vmem:[%s3714_s0 + $0x48] sm:$0xff]  ;;  %v2400_v24 = vld [vmem:[%s3717_s3 + $0x74] ss:$8 sps:$4 sm:$0xff]   ;;  %v2402_v27 = vld [vmem:[%s3717_s3 + $0x70] ss:$8 sps:$4 sm:$0xff]  }
  0x1b   :  { %958 = vmatpush1.bf16.msra.mxu0 %v2384_v9  ;;  %v2399_v23 = vld [vmem:[%s3717_s3 + $0x60] ss:$8 sps:$4 sm:$0xff]   ;;  %v49_v25 = vld [vmem:[%s3714_s0 + $0x38] sm:$0xff]  ;;  %v52_v26 = vld [vmem:[%s3714_s0 + $0x50] sm:$0xff] }
  0x1c   :  { %959 = vmatprep.subr.bf16.mxu0 %v2385_v10  ;;  %v2403_v28 = vld [vmem:[%s3717_s3 + $0x84] ss:$8 sps:$4 sm:$0xff]   ;;  %v2405_v30 = vld [vmem:[%s3717_s3 + $0x80] ss:$8 sps:$4 sm:$0xff]   ;;  %v2406_v31 = vld [vmem:[%s3717_s3 + $0x94] ss:$8 sps:$4 sm:$0xff]  }
  0x1d   :  { %2340 = vset.pattern.permute.xlu1 %v2688_v1  ;;  %99 = vperm.xlu0 %2338, %v44_v5   ;;  %v2837_v29 = vld [vmem:[%s3714_s0 + $0x68] sm:$0xff]  ;;  %v50_v32 = vld [vmem:[%s3714_s0 + $0x40] sm:$0xff]  ;;  %v2408_v33 = vld [vmem:[%s3717_s3 + $0x90] ss:$8 sps:$4 sm:$0xff]  }
  0x1e   :  { %104 = vperm.xlu1 %2340, %v45_v7   ;;  %v2409_v34 = vld [vmem:[%s3717_s3 + $0xa4] ss:$8 sps:$4 sm:$0xff]   ;;  %v56_v35 = vld [vmem:[%s3714_s0 + $0x70] sm:$0xff]  ;;  %v2411_v36 = vld [vmem:[%s3717_s3 + $0xa0] ss:$8 sps:$4 sm:$0xff]  }
  0x1f   :  { %960 = vmatpush1.bf16.msra.mxu0 %v2387_v12  ;;  %v2412_v37 = vld [vmem:[%s3717_s3 + $0xb4] ss:$8 sps:$4 sm:$0xff]   ;;  %v2414_v38 = vld [vmem:[%s3717_s3 + $0xb0] ss:$8 sps:$4 sm:$0xff]   ;;  %v2415_v39 = vld [vmem:[%s3717_s3 + $0xc4] ss:$8 sps:$4 sm:$0xff]  }
  0x20   :  { %961 = vmatprep.subr.bf16.mxu0 %v2388_v13  ;;  %v59_v40 = vld [vmem:[%s3714_s0 + $0x88] sm:$0xff]  ;;  %v53_v42 = vld [vmem:[%s3714_s0 + $0x58] sm:$0xff]  ;;  %v60_v44 = vld [vmem:[%s3714_s0 + $0x90] sm:$0xff] }
  0x21   :  { %114 = vperm.xlu0 %2338, %v47_v11   ;;  %v2417_v41 = vld [vmem:[%s3717_s3 + $0xc0] ss:$8 sps:$4 sm:$0xff]   ;;  %v2418_v43 = vld [vmem:[%s3717_s3 + $0xd4] ss:$8 sps:$4 sm:$0xff]   ;;  %v2420_v45 = vld [vmem:[%s3717_s3 + $0xd0] ss:$8 sps:$4 sm:$0xff]  }
  0x22   :  { %2341 = vset.pattern.permute.xlu1 %v2687_v0  ;;  %v2421_v46 = vld [vmem:[%s3717_s3 + $0xe4] ss:$8 sps:$4 sm:$0xff]   ;;  %v2423_v48 = vld [vmem:[%s3717_s3 + $0xe0] ss:$8 sps:$4 sm:$0xff]   ;;  %v2424_v49 = vld [vmem:[%s3717_s3 + $0xf4] ss:$8 sps:$4 sm:$0xff]  }
  0x23   :  { %401 = vperm.xlu1 %2341, %v45_v7   ;;  %962 = vmatpush1.bf16.msra.mxu0 %v2390_v14  ;;  %v63_v47 = vld [vmem:[%s3714_s0 + $0xa8] sm:$0xff]  ;;  %v54_v50 = vld [vmem:[%s3714_s0 + $0x60] sm:$0xff]  ;;  %v2426_v51 = vld [vmem:[%s3717_s3 + $0xf0] ss:$8 sps:$4 sm:$0xff]  }
  0x24   :  { %963 = vmatprep.subr.bf16.mxu0 %v2391_v16  ;;  %v64_v52 = vld [vmem:[%s3714_s0 + $0xb0] sm:$0xff]  ;;  %v57_v53 = vld [vmem:[%s3714_s0 + $0x78] sm:$0xff]  ;;  %v2927_v54 = vld [vmem:[%s3714_s0 + $0xc8] sm:$0xff] }
  0x25   :  { %2343 = vset.pattern.permute.xlu0 %v2687_v0  ;;  %v68_v55 = vld [vmem:[%s3714_s0 + $0xd0] sm:$0xff]  ;;  %v58_v56 = vld [vmem:[%s3714_s0 + $0x80] sm:$0xff]  ;;  %v2943_v57 = vld [vmem:[%s3714_s0 + $0xe8] sm:$0xff] }
  0x26   :  { %397 = vperm.xlu0 %2343, %v44_v5   ;;  %v72_v58 = vld [vmem:[%s3714_s0 + $0xf0] sm:$0xff]  ;;  %v61_v59 = vld [vmem:[%s3714_s0 + $0x98] sm:$0xff]  ;;  %v62_v60 = vld [vmem:[%s3714_s0 + $0xa0] sm:$0xff] }
  0x27   :  { %2342 = vset.pattern.permute.xlu1 %v2688_v1  ;;  %964 = vmatpush1.bf16.msra.mxu0 %v2393_v18  ;;  %v86_v3 = vld [vmem:[%s3715_s1] ss:$2 sm:$0x3]  ;;  %v2168_v7 = vld [vmem:[%s3715_s1 + $0x1] ss:$2 sm:$0x3] }
  0x28   :  { %109 = vperm.xlu1 %2342, %v46_v15   ;;  %965 = vmatprep.subr.bf16.mxu0 %v2394_v19  ;;  %v74_v4 = vld [vmem:[%s3716_s2] sm:$0x3]  ;;  %v2974_v5 = vrot.slane %v86_v3, %v2963_v63  ;;  %v2977_v6 = vrot.slane %v86_v3, %v2965_v2  ;;  %v65_v9 = vld [vmem:[%s3714_s0 + $0xb8] sm:$0xff]  ;;  %v2992_v13 = vrot.slane %v2168_v7, %v2963_v63 }
  0x29   :  { %v2983_v8 = vrot.slane %v74_v4, %v2963_v63  ;;  %v2998_v16 = vrot.slane %v2168_v7, %v2965_v2 }
  0x2a   :  { %413 = vperm.xlu0 %2343, %v48_v17  }
  0x2b   :  { %966 = vmatpush1.bf16.msra.mxu0 %v2396_v20 }
  0x2c   :  { %2344 = vset.pattern.permute.xlu1 %v2687_v0  ;;  %967 = vmatprep.subr.bf16.mxu0 %v2397_v21 }
  0x2d   :  { %405 = vperm.xlu1 %2344, %v46_v15  }
  0x2e   :  { %2346 = vset.pattern.permute.xlu0 %v2688_v1 }
  0x2f   :  { %119 = vperm.xlu0 %2346, %v48_v17   ;;  %968 = vmatpush1.bf16.msra.mxu0 %v2399_v23 }
  0x30   :  { %969 = vmatprep.subr.bf16.mxu0 %v2400_v24 }
  0x31   :  { %409 = vperm.xlu1 %2344, %v47_v11   ;;  %v2989_v11 = vrot.slane %v74_v4, %v2965_v2 }
  0x33   :  { %134 = vperm.xlu0 %2346, %v51_v22   ;;  %970 = vmatpush1.bf16.msra.mxu0 %v2402_v27 }
  0x34   :  { %971 = vmatprep.subr.bf16.mxu0 %v2403_v28 }
  0x35   :  { %2345 = vset.pattern.permute.xlu1 %v2688_v1 }
  0x36   :  { %124 = vperm.xlu1 %2345, %v49_v25  }
  0x37   :  { %139 = vperm.xlu0 %2346, %v52_v26   ;;  %972 = vmatpush1.bf16.msra.mxu0 %v2405_v30 }
  0x38   :  { %973 = vmatprep.subr.bf16.mxu0 %v2406_v31 }
  0x3a   :  { %2347 = vset.pattern.permute.xlu1 %v2687_v0 }
  0x3b   :  { %417 = vperm.xlu1 %2347, %v49_v25   ;;  %154 = vperm.xlu0 %2346, %v2837_v29  }
  0x3c   :  { %974 = vmatpush1.bf16.msra.mxu0 %v2408_v33 }
  0x3d   :  { %975 = vmatprep.subr.bf16.mxu0 %v2409_v34  ;;  %v66_v34 = vld [vmem:[%s3714_s0 + $0xc0] sm:$0xff] }
  0x3f   :  { %2348 = vset.pattern.permute.xlu1 %v2688_v1  ;;  %2353 = vset.pattern.permute.xlu0 %v2687_v0 }
  0x40   :  { %129 = vperm.xlu1 %2348, %v50_v32   ;;  %429 = vperm.xlu0 %2353, %v52_v26  }
  0x41   :  { %976 = vmatpush1.bf16.msra.mxu0 %v2411_v36 }
  0x42   :  { %977 = vmatprep.subr.bf16.mxu0 %v2412_v37 }
  0x44   :  { %2349 = vset.pattern.permute.xlu1 %v2687_v0  ;;  %445 = vperm.xlu0 %2353, %v56_v35  }
  0x45   :  { %421 = vperm.xlu1 %2349, %v50_v32   ;;  %978 = vmatpush1.bf16.msra.mxu0 %v2414_v38 }
  0x46   :  { %979 = vmatprep.subr.bf16.mxu0 %v2415_v39 }
  0x48   :  { %2356 = vset.pattern.permute.xlu0 %v2688_v1 }
  0x49   :  { %425 = vperm.xlu1 %2349, %v51_v22   ;;  %159 = vperm.xlu0 %2356, %v56_v35  }
  0x4a   :  { %980 = vmatpush1.bf16.msra.mxu0 %v2417_v41 }
  0x4b   :  { %981 = vmatprep.subr.bf16.mxu0 %v2418_v43 }
  0x4d   :  { %2350 = vset.pattern.permute.xlu1 %v2688_v1  ;;  %174 = vperm.xlu0 %2356, %v59_v40  }
  0x4e   :  { %144 = vperm.xlu1 %2350, %v53_v42   ;;  %982 = vmatpush1.bf16.msra.mxu0 %v2420_v45 }
  0x4f   :  { %983 = vmatprep.subr.bf16.mxu0 %v2421_v46 }
  0x51   :  { %179 = vperm.xlu0 %2356, %v60_v44  }
  0x52   :  { %2351 = vset.pattern.permute.xlu1 %v2687_v0  ;;  %984 = vmatpush1.bf16.msra.mxu0 %v2423_v48 }
  0x53   :  { %433 = vperm.xlu1 %2351, %v53_v42   ;;  %985 = vmatprep.subr.bf16.mxu0 %v2424_v49 }
  0x55   :  { %194 = vperm.xlu0 %2356, %v63_v47  }
  0x56   :  { %986 = vmatpush1.bf16.msra.mxu0 %v2426_v51 }
  0x57   :  { %2352 = vset.pattern.permute.xlu1 %v2688_v1 }
  0x58   :  { %149 = vperm.xlu1 %2352, %v54_v50  }
  0x59   :  { %2363 = vset.pattern.permute.xlu0 %v2687_v0 }
  0x5a   :  { %461 = vperm.xlu0 %2363, %v60_v44  }
  0x5c   :  { %2354 = vset.pattern.permute.xlu1 %v2687_v0 }
  0x5d   :  { %437 = vperm.xlu1 %2354, %v54_v50  }
  0x5e   :  { %477 = vperm.xlu0 %2363, %v64_v52  }
  0x61   :  { %441 = vperm.xlu1 %2354, %v2837_v29  }
  0x62   :  { %2366 = vset.pattern.permute.xlu0 %v2688_v1 }
  0x63   :  { %199 = vperm.xlu0 %2366, %v64_v52  }
  0x65   :  { %2355 = vset.pattern.permute.xlu1 %v2688_v1 }
  0x66   :  { %164 = vperm.xlu1 %2355, %v57_v53  }
  0x67   :  { %214 = vperm.xlu0 %2366, %v2927_v54  }
  0x6a   :  { %2357 = vset.pattern.permute.xlu1 %v2687_v0 }
  0x6b   :  { %449 = vperm.xlu1 %2357, %v57_v53   ;;  %219 = vperm.xlu0 %2366, %v68_v55  }
  0x6f   :  { %2358 = vset.pattern.permute.xlu1 %v2688_v1  ;;  %2371 = vset.pattern.permute.xlu0 %v2687_v0 }
  0x70   :  { %169 = vperm.xlu1 %2358, %v58_v56   ;;  %493 = vperm.xlu0 %2371, %v68_v55  }
  0x74   :  { %2359 = vset.pattern.permute.xlu1 %v2687_v0  ;;  %2374 = vset.pattern.permute.xlu0 %v2688_v1 }
  0x75   :  { %453 = vperm.xlu1 %2359, %v58_v56   ;;  %234 = vperm.xlu0 %2374, %v2943_v57  }
  0x79   :  { %457 = vperm.xlu1 %2359, %v59_v40   ;;  %239 = vperm.xlu0 %2374, %v72_v58  }
  0x7d   :  { %2360 = vset.pattern.permute.xlu1 %v2688_v1  ;;  %2377 = vset.pattern.permute.xlu0 %v2687_v0 }
  0x7e   :  { %184 = vperm.xlu1 %2360, %v61_v59   ;;  %509 = vperm.xlu0 %2377, %v72_v58  }
  0x82   :  { %2361 = vset.pattern.permute.xlu1 %v2687_v0 }
  0x83   :  { %465 = vperm.xlu1 %2361, %v61_v59  }
  0x87   :  { %2362 = vset.pattern.permute.xlu1 %v2688_v1 }
  0x88   :  { %189 = vperm.xlu1 %2362, %v62_v60  }
  0x8c   :  { %2364 = vset.pattern.permute.xlu1 %v2687_v0 }
  0x8d   :  { %469 = vperm.xlu1 %2364, %v62_v60  }
  0x91   :  { %473 = vperm.xlu1 %2364, %v63_v47  }
  0x94   :  { %v390_v10 = vpop.permute.xlu1 %389  ;;  %v90_v12 = vpop.permute.xlu0 %89 }
  0x95   :  { %v258_v14 = vmul.f32 %v2974_v5, %v90_v12  ;;  %v259_v15 = vmul.f32 %v2977_v6, %v90_v12  ;;  %2365 = vset.pattern.permute.xlu1 %v2688_v1  ;;  %v527_v21 = vmul.f32 %v2992_v13, %v390_v10  ;;  %v528_v23 = vmul.f32 %v2998_v16, %v390_v10 }
  0x96   :  { %204 = vperm.xlu1 %2365, %v65_v9  }
  0x97   :  { %v322_v17 = vadd.f32 %v258_v14, %v2983_v8  ;;  %v323_v18 = vadd.f32 %v259_v15, %v2989_v11 }
  0x98   :  { %v394_v19 = vpop.permute.xlu1 %393  ;;  %v95_v20 = vpop.permute.xlu0 %94 }
  0x99   :  { %v260_v22 = vmul.f32 %v2974_v5, %v95_v20  ;;  %v261_v24 = vmul.f32 %v2977_v6, %v95_v20  ;;  %v591_v25 = vadd.f32 %v527_v21, %v322_v17  ;;  %v529_v26 = vmul.f32 %v2992_v13, %v394_v19  ;;  %v69_v20 = vld [vmem:[%s3714_s0 + $0xd8] sm:$0xff] }
  0x9a   :  { %2367 = vset.pattern.permute.xlu1 %v2687_v0  ;;  %v530_v28 = vmul.f32 %v2998_v16, %v394_v19  ;;  %v592_v31 = vadd.f32 %v528_v23, %v323_v18 }
  0x9b   :  { %v324_v27 = vadd.f32 %v260_v22, %v2983_v8  ;;  %481 = vperm.xlu1 %2367, %v65_v9   ;;  %v325_v29 = vadd.f32 %v261_v24, %v2989_v11  ;;  %v655_v38 = vmax.f32 %v591_v25, 0.0 }
  0x9c   :  { %v100_v30 = vpop.permute.xlu0 %99  ;;  %v656_v43 = vmax.f32 %v592_v31, 0.0 }
  0x9d   :  { %v593_v32 = vadd.f32 %v529_v26, %v324_v27  ;;  %v105_v33 = vpop.permute.xlu1 %104  ;;  %v594_v35 = vadd.f32 %v530_v28, %v325_v29  ;;  %v262_v40 = vmul.f32 %v2974_v5, %v100_v30  ;;  %v263_v41 = vmul.f32 %v2977_v6, %v100_v30 }
  0x9e   :  { %v264_v36 = vmul.f32 %v2974_v5, %v105_v33  ;;  %v265_v37 = vmul.f32 %v2977_v6, %v105_v33 }
  0x9f   :  { %2368 = vset.pattern.permute.xlu1 %v2688_v1  ;;  %v657_v39 = vmax.f32 %v593_v32, 0.0  ;;  %v658_v44 = vmax.f32 %v594_v35, 0.0  ;;  %v326_v52 = vadd.f32 %v262_v40, %v2983_v8  ;;  %v327_v53 = vadd.f32 %v263_v41, %v2989_v11 }
  0xa0   :  { %209 = vperm.xlu1 %2368, %v66_v34   ;;  %v115_v42 = vpop.permute.xlu0 %114  ;;  %v328_v48 = vadd.f32 %v264_v36, %v2983_v8  ;;  %v329_v49 = vadd.f32 %v265_v37, %v2989_v11 }
  0xa1   :  { %v719_v45 = vpack.c.bf16 %v657_v39, %v655_v38  ;;  %v720_v47 = vpack.c.bf16 %v658_v44, %v656_v43  ;;  %v268_v18 = vmul.f32 %v2974_v5, %v115_v42  ;;  %v269_v19 = vmul.f32 %v2977_v6, %v115_v42 }
  0xa2   :  { %v402_v46 = vpop.permute.xlu1 %401 }
  0xa3   :  { %v533_v50 = vmul.f32 %v2992_v13, %v402_v46  ;;  %v534_v51 = vmul.f32 %v2998_v16, %v402_v46  ;;  %987 = vmatprep.mubr.bf16.mxu0 %v720_v47  ;;  %v332_v28 = vadd.f32 %v268_v18, %v2983_v8  ;;  %v333_v29 = vadd.f32 %v269_v19, %v2989_v11  ;;  %v70_v46 = vld [vmem:[%s3714_s0 + $0xe0] sm:$0xff] }
  0xa4   :  { %2369 = vset.pattern.permute.xlu1 %v2687_v0  ;;  %988 = vmatmul.mubr.bf16.vlgmr.msra.gmra.mrb[0].mxu0 %v719_v45 }
  0xa5   :  { %v597_v55 = vadd.f32 %v533_v50, %v328_v48  ;;  %v598_v56 = vadd.f32 %v534_v51, %v329_v49  ;;  %485 = vperm.xlu1 %2369, %v66_v34   ;;  %v398_v58 = vpop.permute.xlu0 %397 }
  0xa6   :  { %v531_v59 = vmul.f32 %v2992_v13, %v398_v58  ;;  %v532_v60 = vmul.f32 %v2998_v16, %v398_v58 }
  0xa7   :  { %v110_v62 = vpop.permute.xlu1 %109  ;;  %v661_v7 = vmax.f32 %v597_v55, 0.0  ;;  %v662_v9 = vmax.f32 %v598_v56, 0.0 }
  0xa8   :  { %v595_v3 = vadd.f32 %v531_v59, %v326_v52  ;;  %v596_v4 = vadd.f32 %v532_v60, %v327_v53  ;;  %v266_v15 = vmul.f32 %v2974_v5, %v110_v62  ;;  %v267_v17 = vmul.f32 %v2977_v6, %v110_v62 }
  0xa9   :  { %489 = vperm.xlu1 %2369, %v2927_v54   ;;  %v414_v10 = vpop.permute.xlu0 %413 }
  0xaa   :  { %v659_v12 = vmax.f32 %v595_v3, 0.0  ;;  %v660_v14 = vmax.f32 %v596_v4, 0.0  ;;  %v330_v25 = vadd.f32 %v266_v15, %v2983_v8  ;;  %v331_v26 = vadd.f32 %v267_v17, %v2989_v11 }
  0xab   :  { %v539_v41 = vmul.f32 %v2992_v13, %v414_v10  ;;  %v540_v42 = vmul.f32 %v2998_v16, %v414_v10 }
  0xac   :  { %v406_v21 = vpop.permute.xlu1 %405  ;;  %v722_v22 = vpack.c.bf16 %v662_v9, %v660_v14  ;;  %v721_v23 = vpack.c.bf16 %v661_v7, %v659_v12 }
  0xad   :  { %v535_v54 = vmul.f32 %v2992_v13, %v406_v21  ;;  %v536_v24 = vmul.f32 %v2998_v16, %v406_v21  ;;  %2370 = vset.pattern.permute.xlu1 %v2688_v1 }
  0xae   :  { %224 = vperm.xlu1 %2370, %v69_v20   ;;  %997 = vmatprep.mubr.bf16.mxu0 %v722_v22  ;;  %v120_v27 = vpop.permute.xlu0 %119  ;;  %v73_v22 = vld [vmem:[%s3714_s0 + $0xf8] sm:$0xff] }
  0xaf   :  { %998 = vmatmul.mubr.bf16.gmra.mrb[4].mxu0 %v721_v23  ;;  %v599_v30 = vadd.f32 %v535_v54, %v330_v25  ;;  %v600_v31 = vadd.f32 %v536_v24, %v331_v26  ;;  %v270_v35 = vmul.f32 %v2974_v5, %v120_v27  ;;  %v271_v36 = vmul.f32 %v2977_v6, %v120_v27 }
  0xb0   :  { %v410_v32 = vpop.permute.xlu1 %409 }
  0xb1   :  { %v537_v33 = vmul.f32 %v2992_v13, %v410_v32  ;;  %v538_v34 = vmul.f32 %v2998_v16, %v410_v32  ;;  %v663_v39 = vmax.f32 %v599_v30, 0.0  ;;  %v664_v40 = vmax.f32 %v600_v31, 0.0 }
  0xb2   :  { %2372 = vset.pattern.permute.xlu1 %v2687_v0  ;;  %v334_v47 = vadd.f32 %v270_v35, %v2983_v8  ;;  %v335_v48 = vadd.f32 %v271_v36, %v2989_v11  ;;  %v135_v53 = vpop.permute.xlu0 %134 }
  0xb3   :  { %v601_v37 = vadd.f32 %v537_v33, %v332_v28  ;;  %v602_v38 = vadd.f32 %v538_v34, %v333_v29  ;;  %497 = vperm.xlu1 %2372, %v69_v20   ;;  %v276_v23 = vmul.f32 %v2974_v5, %v135_v53  ;;  %v277_v54 = vmul.f32 %v2977_v6, %v135_v53 }
  0xb4   :  { %v603_v55 = vadd.f32 %v539_v41, %v334_v47  ;;  %v604_v56 = vadd.f32 %v540_v42, %v335_v48 }
  0xb5   :  { %v665_v43 = vmax.f32 %v601_v37, 0.0  ;;  %v666_v44 = vmax.f32 %v602_v38, 0.0  ;;  %v125_v45 = vpop.permute.xlu1 %124  ;;  %v340_v29 = vadd.f32 %v276_v23, %v2983_v8  ;;  %v341_v30 = vadd.f32 %v277_v54, %v2989_v11 }
  0xb6   :  { %v272_v49 = vmul.f32 %v2974_v5, %v125_v45  ;;  %v273_v50 = vmul.f32 %v2977_v6, %v125_v45  ;;  %v668_v9 = vmax.f32 %v604_v56, 0.0  ;;  %v667_v10 = vmax.f32 %v603_v55, 0.0  ;;  %v140_v12 = vpop.permute.xlu0 %139 }
  0xb7   :  { %2373 = vset.pattern.permute.xlu1 %v2688_v1  ;;  %v724_v51 = vpack.c.bf16 %v666_v44, %v664_v40  ;;  %v723_v52 = vpack.c.bf16 %v665_v43, %v663_v39  ;;  %v278_v32 = vmul.f32 %v2974_v5, %v140_v12  ;;  %v279_v33 = vmul.f32 %v2977_v6, %v140_v12 }
  0xb8   :  { %229 = vperm.xlu1 %2373, %v70_v46   ;;  %v336_v59 = vadd.f32 %v272_v49, %v2983_v8  ;;  %v337_v60 = vadd.f32 %v273_v50, %v2989_v11 }
  0xb9   :  { %1007 = vmatprep.mubr.bf16.mxu0 %v724_v51  ;;  %v342_v40 = vadd.f32 %v278_v32, %v2983_v8  ;;  %v343_v41 = vadd.f32 %v279_v33, %v2989_v11 }
  0xba   :  { %v418_v58 = vpop.permute.xlu1 %417  ;;  %1008 = vmatmul.mubr.bf16.gmra.mrb[8].mxu0 %v723_v52  ;;  %v3071_v24 = vpop.permute.xlu0 %154 }
  0xbb   :  { %v541_v62 = vmul.f32 %v2992_v13, %v418_v58  ;;  %v542_v3 = vmul.f32 %v2998_v16, %v418_v58  ;;  %v284_v23 = vmul.f32 %v2974_v5, %v3071_v24  ;;  %v285_v54 = vmul.f32 %v2977_v6, %v3071_v24 }
  0xbc   :  { %2375 = vset.pattern.permute.xlu1 %v2687_v0 }
  0xbd   :  { %v605_v4 = vadd.f32 %v541_v62, %v336_v59  ;;  %v606_v7 = vadd.f32 %v542_v3, %v337_v60  ;;  %501 = vperm.xlu1 %2375, %v70_v46   ;;  %v2427_v62 = vld [vmem:[#allocation2 + $0x40] sm:$0xff]   ;;  %v348_v32 = vadd.f32 %v284_v23, %v2983_v8  ;;  %v349_v24 = vadd.f32 %v285_v54, %v2989_v11 }
  0xbe   :  { %v2428_v3 = vld [vmem:[#allocation2] sm:$0xff]   ;;  %2218 = vmatprep.subr.bf16.mxu1 %v2427_v62 }
  0xbf   :  { %v669_v14 = vmax.f32 %v605_v4, 0.0  ;;  %v670_v15 = vmax.f32 %v606_v7, 0.0  ;;  %v130_v17 = vpop.permute.xlu1 %129  ;;  %v430_v37 = vpop.permute.xlu0 %429  ;;  %v2429_v4 = vld [vmem:[#allocation2 + $0x48] sm:$0xff]   ;;  %2219 = vmatpush3.bf16.msra.mxu1 %v2428_v3 }
  0xc0   :  { %v274_v20 = vmul.f32 %v2974_v5, %v130_v17  ;;  %v275_v21 = vmul.f32 %v2977_v6, %v130_v17  ;;  %v547_v42 = vmul.f32 %v2992_v13, %v430_v37  ;;  %v548_v43 = vmul.f32 %v2998_v16, %v430_v37  ;;  %2220 = vmatprep.subr.bf16.mxu1 %v2429_v4 }
  0xc1   :  { %505 = vperm.xlu1 %2375, %v2943_v57   ;;  %v726_v18 = vpack.c.bf16 %v670_v15, %v668_v9  ;;  %v725_v19 = vpack.c.bf16 %v669_v14, %v667_v10 }
  0xc2   :  { %v338_v27 = vadd.f32 %v274_v20, %v2983_v8  ;;  %v339_v28 = vadd.f32 %v275_v21, %v2989_v11  ;;  %v611_v52 = vadd.f32 %v547_v42, %v342_v40  ;;  %v612_v53 = vadd.f32 %v548_v43, %v343_v41  ;;  %v2431_v20 = vld [vmem:[#allocation2 + $0x50] sm:$0xff]  }
  0xc3   :  { %1017 = vmatprep.mubr.bf16.mxu0 %v726_v18  ;;  %v446_v18 = vpop.permute.xlu0 %445 }
  0xc4   :  { %v422_v25 = vpop.permute.xlu1 %421  ;;  %1018 = vmatmul.mubr.bf16.gmra.mrb[12].mxu0 %v725_v19  ;;  %v675_v10 = vmax.f32 %v611_v52, 0.0  ;;  %v676_v12 = vmax.f32 %v612_v53, 0.0  ;;  %v2430_v19 = vld [vmem:[#allocation2 + $0x8] sm:$0xff]  }
  0xc5   :  { %v543_v57 = vmul.f32 %v2992_v13, %v422_v25  ;;  %v544_v26 = vmul.f32 %v2998_v16, %v422_v25  ;;  %2376 = vset.pattern.permute.xlu1 %v2688_v1  ;;  %2221 = vmatpush3.bf16.msra.mxu1 %v2430_v19 }
  0xc6   :  { %244 = vperm.xlu1 %2376, %v73_v22   ;;  %2222 = vmatprep.subr.bf16.mxu1 %v2431_v20 }
  0xc7   :  { %v607_v34 = vadd.f32 %v543_v57, %v338_v27  ;;  %v608_v35 = vadd.f32 %v544_v26, %v339_v28  ;;  %v2432_v26 = vld [vmem:[#allocation2 + $0x10] sm:$0xff]   ;;  %v2433_v28 = vld [vmem:[#allocation2 + $0x58] sm:$0xff]  }
  0xc8   :  { %v426_v31 = vpop.permute.xlu1 %425 }
  0xc9   :  { %v545_v36 = vmul.f32 %v2992_v13, %v426_v31  ;;  %v546_v1 = vmul.f32 %v2998_v16, %v426_v31  ;;  %v671_v44 = vmax.f32 %v607_v34, 0.0  ;;  %v672_v45 = vmax.f32 %v608_v35, 0.0  ;;  %v160_v31 = vpop.permute.xlu0 %159  ;;  %2223 = vmatpush3.bf16.msra.mxu1 %v2432_v26  ;;  %v2434_v35 = vld [vmem:[#allocation2 + $0x18] sm:$0xff]  }
  0xca   :  { %2378 = vset.pattern.permute.xlu1 %v2687_v0  ;;  %v287_v37 = vmul.f32 %v2977_v6, %v160_v31  ;;  %2224 = vmatprep.subr.bf16.mxu1 %v2433_v28 }
  0xcb   :  { %v609_v38 = vadd.f32 %v545_v36, %v340_v29  ;;  %v610_v39 = vadd.f32 %v546_v1, %v341_v30  ;;  %513 = vperm.xlu1 %2378, %v73_v22   ;;  %v286_v1 = vmul.f32 %v2974_v5, %v160_v31 }
  0xcd   :  { %v673_v46 = vmax.f32 %v609_v38, 0.0  ;;  %v674_v47 = vmax.f32 %v610_v39, 0.0  ;;  %v145_v48 = vpop.permute.xlu1 %144  ;;  %v2435_v38 = vld [vmem:[#allocation2 + $0x60] sm:$0xff]   ;;  %2225 = vmatpush3.bf16.msra.mxu1 %v2434_v35  ;;  %v175_v62 = vpop.permute.xlu0 %174 }
  0xce   :  { %v280_v49 = vmul.f32 %v2974_v5, %v145_v48  ;;  %v281_v0 = vmul.f32 %v2977_v6, %v145_v48  ;;  %v350_v48 = vadd.f32 %v286_v1, %v2983_v8  ;;  %2226 = vmatprep.subr.bf16.mxu1 %v2435_v38  ;;  %v293_v28 = vmul.f32 %v2977_v6, %v175_v62 }
  0xcf   :  { %v728_v50 = vpack.c.bf16 %v674_v47, %v672_v45  ;;  %v727_v51 = vpack.c.bf16 %v673_v46, %v671_v44  ;;  %v2436_v45 = vld [vmem:[#allocation2 + $0x20] sm:$0xff]   ;;  %v555_v46 = vmul.f32 %v2992_v13, %v446_v18  ;;  %v556_v47 = vmul.f32 %v2998_v16, %v446_v18 }
  0xd0   :  { %v344_v56 = vadd.f32 %v280_v49, %v2983_v8  ;;  %v345_v58 = vadd.f32 %v281_v0, %v2989_v11  ;;  %v351_v49 = vadd.f32 %v287_v37, %v2989_v11  ;;  %v2437_v0 = vld [vmem:[#allocation2 + $0x68] sm:$0xff]  }
  0xd1   :  { %1027 = vmatprep.mubr.bf16.mxu0 %v728_v50  ;;  %2227 = vmatpush3.bf16.msra.mxu1 %v2436_v45  ;;  %v619_v3 = vadd.f32 %v555_v46, %v350_v48  ;;  %v180_v20 = vpop.permute.xlu0 %179  ;;  %v2440_v45 = vld [vmem:[#allocation2 + $0x30] sm:$0xff]  }
  0xd2   :  { %v434_v55 = vpop.permute.xlu1 %433  ;;  %1028 = vmatmul.mubr.bf16.gmra.mrb[16].mxu0 %v727_v51  ;;  %2228 = vmatprep.subr.bf16.mxu1 %v2437_v0  ;;  %v620_v4 = vadd.f32 %v556_v47, %v351_v49  ;;  %v294_v37 = vmul.f32 %v2974_v5, %v180_v20  ;;  %v295_v38 = vmul.f32 %v2977_v6, %v180_v20 }
  0xd3   :  { %v549_v59 = vmul.f32 %v2992_v13, %v434_v55  ;;  %v550_v60 = vmul.f32 %v2998_v16, %v434_v55  ;;  %v683_v19 = vmax.f32 %v619_v3, 0.0 }
  0xd4   :  { %v684_v18 = vmax.f32 %v620_v4, 0.0  ;;  %v358_v48 = vadd.f32 %v294_v37, %v2983_v8  ;;  %v359_v49 = vadd.f32 %v295_v38, %v2989_v11 }
  0xd5   :  { %v613_v7 = vadd.f32 %v549_v59, %v344_v56  ;;  %v614_v9 = vadd.f32 %v550_v60, %v345_v58 }
  0xd7   :  { %v677_v14 = vmax.f32 %v613_v7, 0.0  ;;  %v678_v15 = vmax.f32 %v614_v9, 0.0  ;;  %v150_v17 = vpop.permute.xlu1 %149 }
  0xd8   :  { %v282_v25 = vmul.f32 %v2974_v5, %v150_v17  ;;  %v283_v57 = vmul.f32 %v2977_v6, %v150_v17 }
  0xd9   :  { %v730_v21 = vpack.c.bf16 %v678_v15, %v676_v12  ;;  %v729_v22 = vpack.c.bf16 %v677_v14, %v675_v10 }
  0xda   :  { %v346_v33 = vadd.f32 %v282_v25, %v2983_v8  ;;  %v347_v34 = vadd.f32 %v283_v57, %v2989_v11 }
  0xdb   :  { %1037 = vmatprep.mubr.bf16.mxu0 %v730_v21 }
  0xdc   :  { %v438_v27 = vpop.permute.xlu1 %437  ;;  %1038 = vmatmul.mubr.bf16.gmra.mrb[20].mxu0 %v729_v22 }
  0xdd   :  { %v551_v29 = vmul.f32 %v2992_v13, %v438_v27  ;;  %v552_v30 = vmul.f32 %v2998_v16, %v438_v27  ;;  %v292_v27 = vmul.f32 %v2974_v5, %v175_v62 }
  0xdf   :  { %v615_v39 = vadd.f32 %v551_v29, %v346_v33  ;;  %v616_v40 = vadd.f32 %v552_v30, %v347_v34  ;;  %v3125_v29 = vpop.permute.xlu0 %194  ;;  %v356_v35 = vadd.f32 %v292_v27, %v2983_v8 }
  0xe0   :  { %v442_v36 = vpop.permute.xlu1 %441 }
  0xe1   :  { %v553_v41 = vmul.f32 %v2992_v13, %v442_v36  ;;  %v554_v42 = vmul.f32 %v2998_v16, %v442_v36  ;;  %v679_v50 = vmax.f32 %v615_v39, 0.0  ;;  %v680_v51 = vmax.f32 %v616_v40, 0.0 }
  0xe2   :  { %v357_v36 = vadd.f32 %v293_v28, %v2989_v11 }
  0xe3   :  { %v617_v43 = vadd.f32 %v553_v41, %v348_v32  ;;  %v618_v44 = vadd.f32 %v554_v42, %v349_v24  ;;  %v2438_v24 = vld [vmem:[#allocation2 + $0x28] sm:$0xff]  }
  0xe4   :  { %2229 = vmatpush3.bf16.msra.mxu1 %v2438_v24 }
  0xe5   :  { %v681_v52 = vmax.f32 %v617_v43, 0.0  ;;  %v682_v53 = vmax.f32 %v618_v44, 0.0  ;;  %v165_v55 = vpop.permute.xlu1 %164  ;;  %v462_v43 = vpop.permute.xlu0 %461  ;;  %v2439_v44 = vld [vmem:[#allocation2 + $0x70] sm:$0xff]  }
  0xe6   :  { %v288_v56 = vmul.f32 %v2974_v5, %v165_v55  ;;  %v289_v58 = vmul.f32 %v2977_v6, %v165_v55  ;;  %2230 = vmatprep.subr.bf16.mxu1 %v2439_v44  ;;  %v563_v0 = vmul.f32 %v2992_v13, %v462_v43 }
  0xe7   :  { %v732_v59 = vpack.c.bf16 %v682_v53, %v680_v51  ;;  %v731_v60 = vpack.c.bf16 %v681_v52, %v679_v50  ;;  %v564_v50 = vmul.f32 %v2998_v16, %v462_v43 }
  0xe8   :  { %v352_v9 = vadd.f32 %v288_v56, %v2983_v8  ;;  %v353_v10 = vadd.f32 %v289_v58, %v2989_v11  ;;  %2231 = vmatpush3.bf16.msra.mxu1 %v2440_v45  ;;  %v2441_v58 = vld [vmem:[#allocation2 + $0x78] sm:$0xff]  }
  0xe9   :  { %1047 = vmatprep.mubr.bf16.mxu0 %v732_v59  ;;  %v2442_v59 = vld [vmem:[#allocation2 + $0x38] sm:$0xff]   ;;  %2232 = vmatprep.subr.bf16.mxu1 %v2441_v58 }
  0xea   :  { %v450_v7 = vpop.permute.xlu1 %449  ;;  %1048 = vmatmul.mubr.bf16.gmra.mrb[24].mxu0 %v731_v60 }
  0xeb   :  { %v557_v12 = vmul.f32 %v2992_v13, %v450_v7  ;;  %v558_v14 = vmul.f32 %v2998_v16, %v450_v7  ;;  %v627_v7 = vadd.f32 %v563_v0, %v358_v48 }
  0xec   :  { %2233 = vmatpush3.bf16.msra.mxu1 %v2442_v59 }
  0xed   :  { %v621_v15 = vadd.f32 %v557_v12, %v352_v9  ;;  %v622_v17 = vadd.f32 %v558_v14, %v353_v10  ;;  %v628_v9 = vadd.f32 %v564_v50, %v359_v49  ;;  %v691_v20 = vmax.f32 %v627_v7, 0.0 }
  0xef   :  { %v685_v21 = vmax.f32 %v621_v15, 0.0  ;;  %v686_v22 = vmax.f32 %v622_v17, 0.0  ;;  %v170_v23 = vpop.permute.xlu1 %169 }
  0xf0   :  { %v290_v57 = vmul.f32 %v2974_v5, %v170_v23  ;;  %v291_v26 = vmul.f32 %v2977_v6, %v170_v23 }
  0xf1   :  { %v734_v54 = vpack.c.bf16 %v686_v22, %v684_v18  ;;  %v733_v25 = vpack.c.bf16 %v685_v21, %v683_v19  ;;  %v692_v21 = vmax.f32 %v628_v9, 0.0 }
  0xf2   :  { %v354_v33 = vadd.f32 %v290_v57, %v2983_v8  ;;  %v355_v34 = vadd.f32 %v291_v26, %v2989_v11 }
  0xf3   :  { %1057 = vmatprep.mubr.bf16.mxu0 %v734_v54 }
  0xf4   :  { %v454_v30 = vpop.permute.xlu1 %453  ;;  %1058 = vmatmul.mubr.bf16.gmra.mrb[28].mxu0 %v733_v25  ;;  %v478_v25 = vpop.permute.xlu0 %477 }
  0xf5   :  { %v559_v31 = vmul.f32 %v2992_v13, %v454_v30  ;;  %v560_v32 = vmul.f32 %v2998_v16, %v454_v30  ;;  %v300_v30 = vmul.f32 %v2974_v5, %v3125_v29 }
  0xf7   :  { %v623_v39 = vadd.f32 %v559_v31, %v354_v33  ;;  %v624_v40 = vadd.f32 %v560_v32, %v355_v34  ;;  %v301_v31 = vmul.f32 %v2977_v6, %v3125_v29 }
  0xf8   :  { %v458_v1 = vpop.permute.xlu1 %457  ;;  %v200_v34 = vpop.permute.xlu0 %199 }
  0xf9   :  { %v561_v41 = vmul.f32 %v2992_v13, %v458_v1  ;;  %v562_v42 = vmul.f32 %v2998_v16, %v458_v1  ;;  %v687_v51 = vmax.f32 %v623_v39, 0.0  ;;  %v688_v52 = vmax.f32 %v624_v40, 0.0 }
  0xfa   :  { %v364_v1 = vadd.f32 %v300_v30, %v2983_v8  ;;  %v365_v37 = vadd.f32 %v301_v31, %v2989_v11  ;;  %v302_v39 = vmul.f32 %v2974_v5, %v200_v34  ;;  %v303_v29 = vmul.f32 %v2977_v6, %v200_v34 }
  0xfb   :  { %v625_v46 = vadd.f32 %v561_v41, %v356_v35  ;;  %v626_v47 = vadd.f32 %v562_v42, %v357_v36 }
  0xfc   :  { %v366_v48 = vadd.f32 %v302_v39, %v2983_v8  ;;  %v367_v49 = vadd.f32 %v303_v29, %v2989_v11 }
  0xfd   :  { %v689_v53 = vmax.f32 %v625_v46, 0.0  ;;  %v690_v55 = vmax.f32 %v626_v47, 0.0  ;;  %v185_v56 = vpop.permute.xlu1 %184  ;;  %v571_v46 = vmul.f32 %v2992_v13, %v478_v25  ;;  %v572_v47 = vmul.f32 %v2998_v16, %v478_v25 }
  0xfe   :  { %v296_v60 = vmul.f32 %v2974_v5, %v185_v56  ;;  %v297_v62 = vmul.f32 %v2977_v6, %v185_v56 }
  0xff   :  { %v736_v3 = vpack.c.bf16 %v690_v55, %v688_v52  ;;  %v735_v4 = vpack.c.bf16 %v689_v53, %v687_v51 }
 0x100   :  { %v360_v12 = vadd.f32 %v296_v60, %v2983_v8  ;;  %v361_v14 = vadd.f32 %v297_v62, %v2989_v11  ;;  %v635_v60 = vadd.f32 %v571_v46, %v366_v48  ;;  %v636_v62 = vadd.f32 %v572_v47, %v367_v49 }
 0x101   :  { %1067 = vmatprep.mubr.bf16.mxu0 %v736_v3 }
 0x102   :  { %v466_v10 = vpop.permute.xlu1 %465  ;;  %1068 = vmatmul.mubr.bf16.gmra.mrb[32].mxu0 %v735_v4 }
 0x103   :  { %v565_v15 = vmul.f32 %v2992_v13, %v466_v10  ;;  %v566_v17 = vmul.f32 %v2998_v16, %v466_v10 }
 0x105   :  { %v629_v18 = vadd.f32 %v565_v15, %v360_v12  ;;  %v630_v19 = vadd.f32 %v566_v17, %v361_v14  ;;  %v700_v15 = vmax.f32 %v636_v62, 0.0  ;;  %v699_v17 = vmax.f32 %v635_v60, 0.0 }
 0x107   :  { %v693_v22 = vmax.f32 %v629_v18, 0.0  ;;  %v694_v23 = vmax.f32 %v630_v19, 0.0  ;;  %v190_v54 = vpop.permute.xlu1 %189 }
 0x108   :  { %v298_v27 = vmul.f32 %v2974_v5, %v190_v54  ;;  %v299_v28 = vmul.f32 %v2977_v6, %v190_v54 }
 0x109   :  { %v738_v57 = vpack.c.bf16 %v694_v23, %v692_v21  ;;  %v737_v26 = vpack.c.bf16 %v693_v22, %v691_v20  ;;  %v215_v21 = vpop.permute.xlu0 %214 }
 0x10a   :  { %v362_v35 = vadd.f32 %v298_v27, %v2983_v8  ;;  %v363_v36 = vadd.f32 %v299_v28, %v2989_v11 }
 0x10b   :  { %1077 = vmatprep.mubr.bf16.mxu0 %v738_v57  ;;  %v308_v57 = vmul.f32 %v2974_v5, %v215_v21 }
 0x10c   :  { %v470_v32 = vpop.permute.xlu1 %469  ;;  %1078 = vmatmul.mubr.bf16.gmra.mrb[36].mxu0 %v737_v26  ;;  %v309_v26 = vmul.f32 %v2977_v6, %v215_v21 }
 0x10d   :  { %v567_v24 = vmul.f32 %v2992_v13, %v470_v32  ;;  %v568_v33 = vmul.f32 %v2998_v16, %v470_v32  ;;  %v220_v31 = vpop.permute.xlu0 %219 }
 0x10e   :  { %v373_v34 = vadd.f32 %v309_v26, %v2989_v11  ;;  %v310_v39 = vmul.f32 %v2974_v5, %v220_v31  ;;  %v311_v29 = vmul.f32 %v2977_v6, %v220_v31 }
 0x10f   :  { %v631_v40 = vadd.f32 %v567_v24, %v362_v35  ;;  %v632_v41 = vadd.f32 %v568_v33, %v363_v36  ;;  %v372_v33 = vadd.f32 %v308_v57, %v2983_v8 }
 0x110   :  { %v474_v38 = vpop.permute.xlu1 %473  ;;  %v374_v48 = vadd.f32 %v310_v39, %v2983_v8  ;;  %v375_v49 = vadd.f32 %v311_v29, %v2989_v11 }
 0x111   :  { %v569_v42 = vmul.f32 %v2992_v13, %v474_v38  ;;  %v570_v43 = vmul.f32 %v2998_v16, %v474_v38  ;;  %v695_v0 = vmax.f32 %v631_v40, 0.0  ;;  %v696_v50 = vmax.f32 %v632_v41, 0.0 }
 0x113   :  { %v633_v44 = vadd.f32 %v569_v42, %v364_v1  ;;  %v634_v45 = vadd.f32 %v570_v43, %v365_v37  ;;  %v494_v42 = vpop.permute.xlu0 %493 }
 0x115   :  { %v697_v51 = vmax.f32 %v633_v44, 0.0  ;;  %v698_v52 = vmax.f32 %v634_v45, 0.0  ;;  %v205_v53 = vpop.permute.xlu1 %204 }
 0x116   :  { %v304_v55 = vmul.f32 %v2974_v5, %v205_v53  ;;  %v305_v56 = vmul.f32 %v2977_v6, %v205_v53 }
 0x117   :  { %v740_v58 = vpack.c.bf16 %v698_v52, %v696_v50  ;;  %v739_v59 = vpack.c.bf16 %v697_v51, %v695_v0  ;;  %v579_v0 = vmul.f32 %v2992_v13, %v494_v42  ;;  %v580_v50 = vmul.f32 %v2998_v16, %v494_v42 }
 0x118   :  { %v368_v4 = vadd.f32 %v304_v55, %v2983_v8  ;;  %v369_v7 = vadd.f32 %v305_v56, %v2989_v11 }
 0x119   :  { %1087 = vmatprep.mubr.bf16.mxu0 %v740_v58  ;;  %v643_v56 = vadd.f32 %v579_v0, %v374_v48  ;;  %v644_v58 = vadd.f32 %v580_v50, %v375_v49 }
 0x11a   :  { %v482_v3 = vpop.permute.xlu1 %481  ;;  %1088 = vmatmul.mubr.bf16.gmra.mrb[40].mxu0 %v739_v59 }
 0x11b   :  { %v573_v9 = vmul.f32 %v2992_v13, %v482_v3  ;;  %v574_v10 = vmul.f32 %v2998_v16, %v482_v3 }
 0x11d   :  { %v637_v12 = vadd.f32 %v573_v9, %v368_v4  ;;  %v638_v14 = vadd.f32 %v574_v10, %v369_v7  ;;  %v707_v10 = vmax.f32 %v643_v56, 0.0 }
 0x11f   :  { %v701_v18 = vmax.f32 %v637_v12, 0.0  ;;  %v702_v19 = vmax.f32 %v638_v14, 0.0  ;;  %v210_v20 = vpop.permute.xlu1 %209  ;;  %v708_v12 = vmax.f32 %v644_v58, 0.0 }
 0x120   :  { %v306_v54 = vmul.f32 %v2974_v5, %v210_v20  ;;  %v307_v25 = vmul.f32 %v2977_v6, %v210_v20 }
 0x121   :  { %v742_v22 = vpack.c.bf16 %v702_v19, %v700_v15  ;;  %v741_v23 = vpack.c.bf16 %v701_v18, %v699_v17  ;;  %v235_v18 = vpop.permute.xlu0 %234 }
 0x122   :  { %v370_v32 = vadd.f32 %v306_v54, %v2983_v8  ;;  %v371_v24 = vadd.f32 %v307_v25, %v2989_v11  ;;  %v317_v54 = vmul.f32 %v2977_v6, %v235_v18 }
 0x123   :  { %1097 = vmatprep.mubr.bf16.mxu0 %v742_v22 }
 0x124   :  { %v486_v27 = vpop.permute.xlu1 %485  ;;  %1098 = vmatmul.mubr.bf16.gmra.mrb[44].mxu0 %v741_v23  ;;  %v316_v23 = vmul.f32 %v2974_v5, %v235_v18 }
 0x125   :  { %v575_v28 = vmul.f32 %v2992_v13, %v486_v27  ;;  %v576_v30 = vmul.f32 %v2998_v16, %v486_v27  ;;  %v240_v27 = vpop.permute.xlu0 %239 }
 0x126   :  { %v380_v31 = vadd.f32 %v316_v23, %v2983_v8 }
 0x127   :  { %v639_v36 = vadd.f32 %v575_v28, %v370_v32  ;;  %v640_v1 = vadd.f32 %v576_v30, %v371_v24  ;;  %v381_v32 = vadd.f32 %v317_v54, %v2989_v11 }
 0x128   :  { %v490_v35 = vpop.permute.xlu1 %489 }
 0x129   :  { %v577_v37 = vmul.f32 %v2992_v13, %v490_v35  ;;  %v578_v38 = vmul.f32 %v2998_v16, %v490_v35  ;;  %v703_v43 = vmax.f32 %v639_v36, 0.0  ;;  %v704_v44 = vmax.f32 %v640_v1, 0.0  ;;  %v510_v29 = vpop.permute.xlu0 %509 }
 0x12a   :  { %v318_v1 = vmul.f32 %v2974_v5, %v240_v27  ;;  %v588_v48 = vmul.f32 %v2998_v16, %v510_v29 }
 0x12b   :  { %v641_v40 = vadd.f32 %v577_v37, %v372_v33  ;;  %v642_v41 = vadd.f32 %v578_v38, %v373_v34  ;;  %v319_v37 = vmul.f32 %v2977_v6, %v240_v27 }
 0x12d   :  { %v705_v45 = vmax.f32 %v641_v40, 0.0  ;;  %v706_v46 = vmax.f32 %v642_v41, 0.0  ;;  %v225_v47 = vpop.permute.xlu1 %224 }
 0x12e   :  { %v312_v51 = vmul.f32 %v2974_v5, %v225_v47  ;;  %v313_v52 = vmul.f32 %v2977_v6, %v225_v47  ;;  %v587_v47 = vmul.f32 %v2992_v13, %v510_v29 }
 0x12f   :  { %v744_v53 = vpack.c.bf16 %v706_v46, %v704_v44  ;;  %v743_v55 = vpack.c.bf16 %v705_v45, %v703_v43  ;;  %v382_v45 = vadd.f32 %v318_v1, %v2983_v8  ;;  %v383_v46 = vadd.f32 %v319_v37, %v2989_v11 }
 0x130   :  { %v376_v60 = vadd.f32 %v312_v51, %v2983_v8  ;;  %v377_v62 = vadd.f32 %v313_v52, %v2989_v11 }
 0x131   :  { %1107 = vmatprep.mubr.bf16.mxu0 %v744_v53  ;;  %v651_v52 = vadd.f32 %v587_v47, %v382_v45  ;;  %v652_v53 = vadd.f32 %v588_v48, %v383_v46 }
 0x132   :  { %v498_v59 = vpop.permute.xlu1 %497  ;;  %1108 = vmatmul.mubr.bf16.gmra.mrb[48].mxu0 %v743_v55 }
 0x133   :  { %v581_v3 = vmul.f32 %v2992_v13, %v498_v59  ;;  %v582_v4 = vmul.f32 %v2998_v16, %v498_v59 }
 0x135   :  { %v645_v7 = vadd.f32 %v581_v3, %v376_v60  ;;  %v646_v9 = vadd.f32 %v582_v4, %v377_v62  ;;  %v716_v4 = vmax.f32 %v652_v53, 0.0 }
 0x137   :  { %v709_v14 = vmax.f32 %v645_v7, 0.0  ;;  %v710_v15 = vmax.f32 %v646_v9, 0.0  ;;  %v230_v17 = vpop.permute.xlu1 %229 }
 0x138   :  { %v314_v21 = vmul.f32 %v2974_v5, %v230_v17  ;;  %v315_v22 = vmul.f32 %v2977_v6, %v230_v17 }
 0x139   :  { %v746_v19 = vpack.c.bf16 %v710_v15, %v708_v12  ;;  %v745_v20 = vpack.c.bf16 %v709_v14, %v707_v10 }
 0x13a   :  { %v378_v28 = vadd.f32 %v314_v21, %v2983_v8  ;;  %v379_v30 = vadd.f32 %v315_v22, %v2989_v11 }
 0x13b   :  { %1117 = vmatprep.mubr.bf16.mxu0 %v746_v19 }
 0x13c   :  { %v502_v25 = vpop.permute.xlu1 %501  ;;  %1118 = vmatmul.mubr.bf16.gmra.mrb[52].mxu0 %v745_v20 }
 0x13d   :  { %v583_v57 = vmul.f32 %v2992_v13, %v502_v25  ;;  %v584_v26 = vmul.f32 %v2998_v16, %v502_v25 }
 0x13f   :  { %v647_v33 = vadd.f32 %v583_v57, %v378_v28  ;;  %v648_v34 = vadd.f32 %v584_v26, %v379_v30 }
 0x140   :  { %v506_v24 = vpop.permute.xlu1 %505 }
 0x141   :  { %v585_v35 = vmul.f32 %v2992_v13, %v506_v24  ;;  %v586_v36 = vmul.f32 %v2998_v16, %v506_v24  ;;  %v711_v40 = vmax.f32 %v647_v33, 0.0  ;;  %v712_v41 = vmax.f32 %v648_v34, 0.0 }
 0x143   :  { %v649_v38 = vadd.f32 %v585_v35, %v380_v31  ;;  %v650_v39 = vadd.f32 %v586_v36, %v381_v32 }
 0x145   :  { %v713_v42 = vmax.f32 %v649_v38, 0.0  ;;  %v714_v43 = vmax.f32 %v650_v39, 0.0  ;;  %v245_v44 = vpop.permute.xlu1 %244 }
 0x146   :  { %v320_v49 = vmul.f32 %v2974_v5, %v245_v44  ;;  %v321_v0 = vmul.f32 %v2977_v6, %v245_v44  ;;  %v715_v5 = vmax.f32 %v651_v52, 0.0 }
 0x147   :  { %v748_v50 = vpack.c.bf16 %v714_v43, %v712_v41  ;;  %v747_v51 = vpack.c.bf16 %v713_v42, %v711_v40 }
 0x148   :  { %v384_v56 = vadd.f32 %v320_v49, %v2983_v8  ;;  %v385_v58 = vadd.f32 %v321_v0, %v2989_v11  ;;  %v783_v8 = vld [vmem:[%s3718_s4] sm:$0x3] }
 0x149   :  { %1127 = vmatprep.mubr.bf16.mxu0 %v748_v50  ;;  %v3225_v11 = vrot.slane %v783_v8, %v2963_v63 }
 0x14a   :  { %v514_v55 = vpop.permute.xlu1 %513  ;;  %1128 = vmatmul.mubr.bf16.gmra.mrb[56].mxu0 %v747_v51 }
 0x14b   :  { %v589_v59 = vmul.f32 %v2992_v13, %v514_v55  ;;  %v590_v60 = vmul.f32 %v2998_v16, %v514_v55  ;;  %v3228_v13 = vrot.slane %v783_v8, %v2965_v2 }
 0x14d   :  { %v653_v62 = vadd.f32 %v589_v59, %v384_v56  ;;  %v654_v3 = vadd.f32 %v590_v60, %v385_v58 }
 0x14f   :  { %v717_v6 = vmax.f32 %v653_v62, 0.0  ;;  %v718_v7 = vmax.f32 %v654_v3, 0.0 }
 0x151   :  { %v750_v9 = vpack.c.bf16 %v718_v7, %v716_v4  ;;  %v749_v10 = vpack.c.bf16 %v717_v6, %v715_v5 }
 0x153   :  { %1137 = vmatprep.mubr.bf16.mxu0 %v750_v9 }
 0x154   :  { %1138 = vmatmul.mubr.bf16.gmra.mrb[60].mxu0 %v749_v10 }
 0x177   :  { %v989_v16 = vpop.f32.mrb[0].mxu0 }
 0x178   :  { %v990_v12 = vadd.f32 %v989_v16, %v3225_v11  ;;  %v991_v14 = vpop.f32.mrb[1].mxu0 }
 0x179   :  { %v992_v15 = vadd.f32 %v991_v14, %v3228_v13  ;;  %v993_v17 = vpop.f32.mrb[2].mxu0 }
 0x17a   :  { %v994_v18 = vadd.f32 %v993_v17, %v3225_v11  ;;  %v995_v19 = vpop.f32.mrb[3].mxu0  ;;  %v1148_v21 = vmax.f32 %v990_v12, 0.0 }
 0x17b   :  { %v996_v20 = vadd.f32 %v995_v19, %v3228_v13  ;;  %v1149_v23 = vmax.f32 %v992_v15, 0.0 }
 0x17c   :  { %v1150_v22 = vmax.f32 %v994_v18, 0.0 }
 0x17d   :  { %v1151_v63 = vmax.f32 %v996_v20, 0.0 }
 0x17e   :  { %v1212_v54 = vpack.c.bf16 %v1150_v22, %v1148_v21 }
 0x17f   :  { %v1213_v25 = vpack.c.bf16 %v1151_v63, %v1149_v23 }
 0x181   :  { %1411 = vmatprep.mubr.bf16.mxu1 %v1213_v25 }
 0x182   :  { %v999_v2 = vpop.f32.mrb[4].mxu0  ;;  %1412 = vmatmul.mubr.bf16.vlgmr.msra.gmra.mrb[0].mxu1 %v1212_v54 }
 0x183   :  { %v1000_v57 = vadd.f32 %v999_v2, %v3225_v11  ;;  %v1001_v26 = vpop.f32.mrb[5].mxu0 }
 0x184   :  { %v1002_v27 = vadd.f32 %v1001_v26, %v3228_v13  ;;  %v1003_v28 = vpop.f32.mrb[6].mxu0 }
 0x185   :  { %v1004_v30 = vadd.f32 %v1003_v28, %v3225_v11  ;;  %v1005_v31 = vpop.f32.mrb[7].mxu0  ;;  %v1152_v24 = vmax.f32 %v1000_v57, 0.0 }
 0x186   :  { %v1006_v32 = vadd.f32 %v1005_v31, %v3228_v13  ;;  %v1153_v34 = vmax.f32 %v1002_v27, 0.0 }
 0x187   :  { %v1154_v33 = vmax.f32 %v1004_v30, 0.0 }
 0x188   :  { %v1155_v35 = vmax.f32 %v1006_v32, 0.0 }
 0x189   :  { %v1214_v36 = vpack.c.bf16 %v1154_v33, %v1152_v24 }
 0x18a   :  { %v1215_v1 = vpack.c.bf16 %v1155_v35, %v1153_v34 }
 0x18c   :  { %1419 = vmatprep.mubr.bf16.mxu1 %v1215_v1 }
 0x18d   :  { %v1009_v37 = vpop.f32.mrb[8].mxu0  ;;  %1420 = vmatmul.mubr.bf16.gmra.mrb[4].mxu1 %v1214_v36 }
 0x18e   :  { %v1010_v38 = vadd.f32 %v1009_v37, %v3225_v11  ;;  %v1011_v39 = vpop.f32.mrb[9].mxu0 }
 0x18f   :  { %v1012_v29 = vadd.f32 %v1011_v39, %v3228_v13  ;;  %v1013_v40 = vpop.f32.mrb[10].mxu0 }
 0x190   :  { %v1014_v41 = vadd.f32 %v1013_v40, %v3225_v11  ;;  %v1015_v42 = vpop.f32.mrb[11].mxu0  ;;  %v1156_v44 = vmax.f32 %v1010_v38, 0.0 }
 0x191   :  { %v1016_v43 = vadd.f32 %v1015_v42, %v3228_v13  ;;  %v1157_v46 = vmax.f32 %v1012_v29, 0.0 }
 0x192   :  { %v1158_v45 = vmax.f32 %v1014_v41, 0.0 }
 0x193   :  { %v1159_v47 = vmax.f32 %v1016_v43, 0.0 }
 0x194   :  { %v1216_v48 = vpack.c.bf16 %v1158_v45, %v1156_v44 }
 0x195   :  { %v1217_v49 = vpack.c.bf16 %v1159_v47, %v1157_v46 }
 0x197   :  { %v1019_v0 = vpop.f32.mrb[12].mxu0  ;;  %1427 = vmatprep.mubr.bf16.mxu1 %v1217_v49 }
 0x198   :  { %v1020_v50 = vadd.f32 %v1019_v0, %v3225_v11  ;;  %v1021_v51 = vpop.f32.mrb[13].mxu0  ;;  %1428 = vmatmul.mubr.bf16.gmra.mrb[8].mxu1 %v1216_v48 }
 0x199   :  { %v1022_v52 = vadd.f32 %v1021_v51, %v3228_v13  ;;  %v1023_v53 = vpop.f32.mrb[14].mxu0 }
 0x19a   :  { %v1024_v55 = vadd.f32 %v1023_v53, %v3225_v11  ;;  %v1025_v56 = vpop.f32.mrb[15].mxu0  ;;  %v1160_v59 = vmax.f32 %v1020_v50, 0.0 }
 0x19b   :  { %v1026_v58 = vadd.f32 %v1025_v56, %v3228_v13  ;;  %v1161_v62 = vmax.f32 %v1022_v52, 0.0 }
 0x19c   :  { %v1162_v60 = vmax.f32 %v1024_v55, 0.0 }
 0x19d   :  { %v1163_v3 = vmax.f32 %v1026_v58, 0.0 }
 0x19e   :  { %v1218_v5 = vpack.c.bf16 %v1162_v60, %v1160_v59 }
 0x19f   :  { %v1219_v4 = vpack.c.bf16 %v1163_v3, %v1161_v62 }
 0x1a1   :  { %1435 = vmatprep.mubr.bf16.mxu1 %v1219_v4 }
 0x1a2   :  { %1436 = vmatmul.mubr.bf16.gmra.mrb[12].mxu1 %v1218_v5 }
 0x1a5   :  { %v1029_v6 = vpop.f32.mrb[16].mxu0 }
 0x1a6   :  { %v1030_v7 = vadd.f32 %v1029_v6, %v3225_v11  ;;  %v1031_v9 = vpop.f32.mrb[17].mxu0 }
 0x1a7   :  { %v1032_v10 = vadd.f32 %v1031_v9, %v3228_v13  ;;  %v1033_v8 = vpop.f32.mrb[18].mxu0 }
 0x1a8   :  { %v1034_v16 = vadd.f32 %v1033_v8, %v3225_v11  ;;  %v1035_v12 = vpop.f32.mrb[19].mxu0  ;;  %v1164_v15 = vmax.f32 %v1030_v7, 0.0 }
 0x1a9   :  { %v1036_v14 = vadd.f32 %v1035_v12, %v3228_v13  ;;  %v1165_v18 = vmax.f32 %v1032_v10, 0.0 }
 0x1aa   :  { %v1166_v17 = vmax.f32 %v1034_v16, 0.0 }
 0x1ab   :  { %v1167_v19 = vmax.f32 %v1036_v14, 0.0 }
 0x1ac   :  { %v1220_v20 = vpack.c.bf16 %v1166_v17, %v1164_v15 }
 0x1ad   :  { %v1221_v21 = vpack.c.bf16 %v1167_v19, %v1165_v18 }
 0x1af   :  { %v1039_v22 = vpop.f32.mrb[20].mxu0  ;;  %1443 = vmatprep.mubr.bf16.mxu1 %v1221_v21 }
 0x1b0   :  { %v1040_v23 = vadd.f32 %v1039_v22, %v3225_v11  ;;  %v1041_v63 = vpop.f32.mrb[21].mxu0  ;;  %1444 = vmatmul.mubr.bf16.gmra.mrb[16].mxu1 %v1220_v20 }
 0x1b1   :  { %v1042_v54 = vadd.f32 %v1041_v63, %v3228_v13  ;;  %v1043_v25 = vpop.f32.mrb[22].mxu0 }
 0x1b2   :  { %v1044_v2 = vadd.f32 %v1043_v25, %v3225_v11  ;;  %v1045_v57 = vpop.f32.mrb[23].mxu0  ;;  %v1168_v27 = vmax.f32 %v1040_v23, 0.0 }
 0x1b3   :  { %v1046_v26 = vadd.f32 %v1045_v57, %v3228_v13  ;;  %v1169_v30 = vmax.f32 %v1042_v54, 0.0 }
 0x1b4   :  { %v1170_v28 = vmax.f32 %v1044_v2, 0.0 }
 0x1b5   :  { %v1171_v31 = vmax.f32 %v1046_v26, 0.0 }
 0x1b6   :  { %v1222_v32 = vpack.c.bf16 %v1170_v28, %v1168_v27 }
 0x1b7   :  { %v1223_v24 = vpack.c.bf16 %v1171_v31, %v1169_v30 }
 0x1b9   :  { %1451 = vmatprep.mubr.bf16.mxu1 %v1223_v24 }
 0x1ba   :  { %1452 = vmatmul.mubr.bf16.gmra.mrb[20].mxu1 %v1222_v32 }
 0x1bd   :  { %v1049_v33 = vpop.f32.mrb[24].mxu0 }
 0x1be   :  { %v1050_v34 = vadd.f32 %v1049_v33, %v3225_v11  ;;  %v1051_v35 = vpop.f32.mrb[25].mxu0 }
 0x1bf   :  { %v1052_v36 = vadd.f32 %v1051_v35, %v3228_v13  ;;  %v1053_v1 = vpop.f32.mrb[26].mxu0 }
 0x1c0   :  { %v1054_v37 = vadd.f32 %v1053_v1, %v3225_v11  ;;  %v1055_v38 = vpop.f32.mrb[27].mxu0  ;;  %v1172_v29 = vmax.f32 %v1050_v34, 0.0 }
 0x1c1   :  { %v1056_v39 = vadd.f32 %v1055_v38, %v3228_v13  ;;  %v1173_v41 = vmax.f32 %v1052_v36, 0.0 }
 0x1c2   :  { %v1174_v40 = vmax.f32 %v1054_v37, 0.0 }
 0x1c3   :  { %v1175_v42 = vmax.f32 %v1056_v39, 0.0 }
 0x1c4   :  { %v1224_v43 = vpack.c.bf16 %v1174_v40, %v1172_v29 }
 0x1c5   :  { %v1225_v44 = vpack.c.bf16 %v1175_v42, %v1173_v41 }
 0x1c7   :  { %v1059_v45 = vpop.f32.mrb[28].mxu0  ;;  %1459 = vmatprep.mubr.bf16.mxu1 %v1225_v44 }
 0x1c8   :  { %v1060_v46 = vadd.f32 %v1059_v45, %v3225_v11  ;;  %v1061_v47 = vpop.f32.mrb[29].mxu0  ;;  %1460 = vmatmul.mubr.bf16.gmra.mrb[24].mxu1 %v1224_v43 }
 0x1c9   :  { %v1062_v48 = vadd.f32 %v1061_v47, %v3228_v13  ;;  %v1063_v49 = vpop.f32.mrb[30].mxu0 }
 0x1ca   :  { %v1064_v0 = vadd.f32 %v1063_v49, %v3225_v11  ;;  %v1065_v50 = vpop.f32.mrb[31].mxu0  ;;  %v1176_v52 = vmax.f32 %v1060_v46, 0.0 }
 0x1cb   :  { %v1066_v51 = vadd.f32 %v1065_v50, %v3228_v13  ;;  %v1177_v55 = vmax.f32 %v1062_v48, 0.0 }
 0x1cc   :  { %v1178_v53 = vmax.f32 %v1064_v0, 0.0 }
 0x1cd   :  { %v1179_v56 = vmax.f32 %v1066_v51, 0.0 }
 0x1ce   :  { %v1226_v58 = vpack.c.bf16 %v1178_v53, %v1176_v52 }
 0x1cf   :  { %v1227_v59 = vpack.c.bf16 %v1179_v56, %v1177_v55 }
 0x1d1   :  { %1467 = vmatprep.mubr.bf16.mxu1 %v1227_v59 }
 0x1d2   :  { %1468 = vmatmul.mubr.bf16.gmra.mrb[28].mxu1 %v1226_v58 }
 0x1d5   :  { %v1069_v60 = vpop.f32.mrb[32].mxu0 }
 0x1d6   :  { %v1070_v62 = vadd.f32 %v1069_v60, %v3225_v11  ;;  %v1071_v3 = vpop.f32.mrb[33].mxu0 }
 0x1d7   :  { %v1072_v5 = vadd.f32 %v1071_v3, %v3228_v13  ;;  %v1073_v4 = vpop.f32.mrb[34].mxu0 }
 0x1d8   :  { %v1074_v6 = vadd.f32 %v1073_v4, %v3225_v11  ;;  %v1075_v7 = vpop.f32.mrb[35].mxu0  ;;  %v1180_v10 = vmax.f32 %v1070_v62, 0.0 }
 0x1d9   :  { %v1076_v9 = vadd.f32 %v1075_v7, %v3228_v13  ;;  %v1181_v16 = vmax.f32 %v1072_v5, 0.0 }
 0x1da   :  { %v1182_v8 = vmax.f32 %v1074_v6, 0.0 }
 0x1db   :  { %v1183_v12 = vmax.f32 %v1076_v9, 0.0 }
 0x1dc   :  { %v1228_v14 = vpack.c.bf16 %v1182_v8, %v1180_v10 }
 0x1dd   :  { %v1229_v15 = vpack.c.bf16 %v1183_v12, %v1181_v16 }
 0x1df   :  { %v1079_v17 = vpop.f32.mrb[36].mxu0  ;;  %1475 = vmatprep.mubr.bf16.mxu1 %v1229_v15 }
 0x1e0   :  { %v1080_v18 = vadd.f32 %v1079_v17, %v3225_v11  ;;  %v1081_v19 = vpop.f32.mrb[37].mxu0  ;;  %1476 = vmatmul.mubr.bf16.gmra.mrb[32].mxu1 %v1228_v14 }
 0x1e1   :  { %v1082_v20 = vadd.f32 %v1081_v19, %v3228_v13  ;;  %v1083_v21 = vpop.f32.mrb[38].mxu0 }
 0x1e2   :  { %v1084_v22 = vadd.f32 %v1083_v21, %v3225_v11  ;;  %v1085_v23 = vpop.f32.mrb[39].mxu0  ;;  %v1184_v54 = vmax.f32 %v1080_v18, 0.0 }
 0x1e3   :  { %v1086_v63 = vadd.f32 %v1085_v23, %v3228_v13  ;;  %v1185_v2 = vmax.f32 %v1082_v20, 0.0 }
 0x1e4   :  { %v1186_v25 = vmax.f32 %v1084_v22, 0.0 }
 0x1e5   :  { %v1187_v57 = vmax.f32 %v1086_v63, 0.0 }
 0x1e6   :  { %v1230_v26 = vpack.c.bf16 %v1186_v25, %v1184_v54 }
 0x1e7   :  { %v1231_v27 = vpack.c.bf16 %v1187_v57, %v1185_v2 }
 0x1e9   :  { %1483 = vmatprep.mubr.bf16.mxu1 %v1231_v27 }
 0x1ea   :  { %1484 = vmatmul.mubr.bf16.gmra.mrb[36].mxu1 %v1230_v26 }
 0x1ed   :  { %v1089_v28 = vpop.f32.mrb[40].mxu0 }
 0x1ee   :  { %v1090_v30 = vadd.f32 %v1089_v28, %v3225_v11  ;;  %v1091_v31 = vpop.f32.mrb[41].mxu0 }
 0x1ef   :  { %v1092_v32 = vadd.f32 %v1091_v31, %v3228_v13  ;;  %v1093_v24 = vpop.f32.mrb[42].mxu0 }
 0x1f0   :  { %v1094_v33 = vadd.f32 %v1093_v24, %v3225_v11  ;;  %v1095_v34 = vpop.f32.mrb[43].mxu0  ;;  %v1188_v36 = vmax.f32 %v1090_v30, 0.0 }
 0x1f1   :  { %v1096_v35 = vadd.f32 %v1095_v34, %v3228_v13  ;;  %v1189_v37 = vmax.f32 %v1092_v32, 0.0 }
 0x1f2   :  { %v1190_v1 = vmax.f32 %v1094_v33, 0.0 }
 0x1f3   :  { %v1191_v38 = vmax.f32 %v1096_v35, 0.0 }
 0x1f4   :  { %v1232_v39 = vpack.c.bf16 %v1190_v1, %v1188_v36 }
 0x1f5   :  { %v1233_v29 = vpack.c.bf16 %v1191_v38, %v1189_v37 }
 0x1f7   :  { %v1099_v40 = vpop.f32.mrb[44].mxu0  ;;  %1491 = vmatprep.mubr.bf16.mxu1 %v1233_v29 }
 0x1f8   :  { %v1100_v41 = vadd.f32 %v1099_v40, %v3225_v11  ;;  %v1101_v42 = vpop.f32.mrb[45].mxu0  ;;  %1492 = vmatmul.mubr.bf16.gmra.mrb[40].mxu1 %v1232_v39 }
 0x1f9   :  { %v1102_v43 = vadd.f32 %v1101_v42, %v3228_v13  ;;  %v1103_v44 = vpop.f32.mrb[46].mxu0 }
 0x1fa   :  { %v1104_v45 = vadd.f32 %v1103_v44, %v3225_v11  ;;  %v1105_v46 = vpop.f32.mrb[47].mxu0  ;;  %v1192_v48 = vmax.f32 %v1100_v41, 0.0 }
 0x1fb   :  { %v1106_v47 = vadd.f32 %v1105_v46, %v3228_v13  ;;  %v1193_v0 = vmax.f32 %v1102_v43, 0.0 }
 0x1fc   :  { %v1194_v49 = vmax.f32 %v1104_v45, 0.0 }
 0x1fd   :  { %v1195_v50 = vmax.f32 %v1106_v47, 0.0 }
 0x1fe   :  { %v1234_v51 = vpack.c.bf16 %v1194_v49, %v1192_v48 }
 0x1ff   :  { %v1235_v52 = vpack.c.bf16 %v1195_v50, %v1193_v0  ;;  %v3297_v0 = vld [vmem:[%s3720_s6] ss:$0 sm:$0xff] }
 0x201   :  { %1499 = vmatprep.mubr.bf16.mxu1 %v1235_v52 }
 0x202   :  { %1500 = vmatmul.mubr.bf16.gmra.mrb[44].mxu1 %v1234_v51 }
 0x205   :  { %v1109_v53 = vpop.f32.mrb[48].mxu0 }
 0x206   :  { %v1110_v55 = vadd.f32 %v1109_v53, %v3225_v11  ;;  %v1111_v56 = vpop.f32.mrb[49].mxu0 }
 0x207   :  { %v1112_v58 = vadd.f32 %v1111_v56, %v3228_v13  ;;  %v1113_v59 = vpop.f32.mrb[50].mxu0 }
 0x208   :  { %v1114_v60 = vadd.f32 %v1113_v59, %v3225_v11  ;;  %v1115_v62 = vpop.f32.mrb[51].mxu0  ;;  %v1196_v5 = vmax.f32 %v1110_v55, 0.0 }
 0x209   :  { %v1116_v3 = vadd.f32 %v1115_v62, %v3228_v13  ;;  %v1197_v6 = vmax.f32 %v1112_v58, 0.0 }
 0x20a   :  { %v1198_v4 = vmax.f32 %v1114_v60, 0.0 }
 0x20b   :  { %v1199_v7 = vmax.f32 %v1116_v3, 0.0 }
 0x20c   :  { %v1236_v9 = vpack.c.bf16 %v1198_v4, %v1196_v5 }
 0x20d   :  { %v1237_v10 = vpack.c.bf16 %v1199_v7, %v1197_v6 }
 0x20f   :  { %v1119_v8 = vpop.f32.mrb[52].mxu0  ;;  %1507 = vmatprep.mubr.bf16.mxu1 %v1237_v10 }
 0x210   :  { %v1120_v16 = vadd.f32 %v1119_v8, %v3225_v11  ;;  %v1121_v12 = vpop.f32.mrb[53].mxu0  ;;  %1508 = vmatmul.mubr.bf16.gmra.mrb[48].mxu1 %v1236_v9 }
 0x211   :  { %v1122_v14 = vadd.f32 %v1121_v12, %v3228_v13  ;;  %v1123_v15 = vpop.f32.mrb[54].mxu0 }
 0x212   :  { %v1124_v17 = vadd.f32 %v1123_v15, %v3225_v11  ;;  %v1125_v18 = vpop.f32.mrb[55].mxu0  ;;  %v1200_v20 = vmax.f32 %v1120_v16, 0.0 }
 0x213   :  { %v1126_v19 = vadd.f32 %v1125_v18, %v3228_v13  ;;  %v1201_v22 = vmax.f32 %v1122_v14, 0.0 }
 0x214   :  { %v1202_v21 = vmax.f32 %v1124_v17, 0.0 }
 0x215   :  { %v1203_v23 = vmax.f32 %v1126_v19, 0.0 }
 0x216   :  { %v1238_v63 = vpack.c.bf16 %v1202_v21, %v1200_v20 }
 0x217   :  { %v1239_v54 = vpack.c.bf16 %v1203_v23, %v1201_v22 }
 0x219   :  { %1515 = vmatprep.mubr.bf16.mxu1 %v1239_v54 }
 0x21a   :  { %1516 = vmatmul.mubr.bf16.gmra.mrb[52].mxu1 %v1238_v63 }
 0x21d   :  { %v1129_v25 = vpop.f32.mrb[56].mxu0 }
 0x21e   :  { %v1130_v2 = vadd.f32 %v1129_v25, %v3225_v11  ;;  %v1131_v57 = vpop.f32.mrb[57].mxu0 }
 0x21f   :  { %v1132_v26 = vadd.f32 %v1131_v57, %v3228_v13  ;;  %v1133_v27 = vpop.f32.mrb[58].mxu0 }
 0x220   :  { %v1134_v28 = vadd.f32 %v1133_v27, %v3225_v11  ;;  %v1135_v30 = vpop.f32.mrb[59].mxu0  ;;  %v1204_v32 = vmax.f32 %v1130_v2, 0.0 }
 0x221   :  { %v1136_v31 = vadd.f32 %v1135_v30, %v3228_v13  ;;  %v1205_v33 = vmax.f32 %v1132_v26, 0.0 }
 0x222   :  { %v1206_v24 = vmax.f32 %v1134_v28, 0.0 }
 0x223   :  { %v1207_v34 = vmax.f32 %v1136_v31, 0.0 }
 0x224   :  { %v1240_v35 = vpack.c.bf16 %v1206_v24, %v1204_v32 }
 0x225   :  { %v1241_v36 = vpack.c.bf16 %v1207_v34, %v1205_v33 }
 0x227   :  { %v1139_v1 = vpop.f32.mrb[60].mxu0  ;;  %1523 = vmatprep.mubr.bf16.mxu1 %v1241_v36 }
 0x228   :  { %v1140_v37 = vadd.f32 %v1139_v1, %v3225_v11  ;;  %v1141_v38 = vpop.f32.mrb[61].mxu0  ;;  %1524 = vmatmul.mubr.bf16.gmra.mrb[56].mxu1 %v1240_v35 }
 0x229   :  { %v1142_v39 = vadd.f32 %v1141_v38, %v3228_v13  ;;  %v1143_v29 = vpop.f32.mrb[62].mxu0 }
 0x22a   :  { %v1144_v40 = vadd.f32 %v1143_v29, %v3225_v11  ;;  %v1145_v41 = vpop.f32.mrb[63].mxu0  ;;  %v1208_v43 = vmax.f32 %v1140_v37, 0.0  ;;  %v3327_v37 = vand.u32 127, %v76_v61 }
 0x22b   :  { %v1146_v42 = vadd.f32 %v1145_v41, %v3228_v13  ;;  %v1209_v45 = vmax.f32 %v1142_v39, 0.0 }
 0x22c   :  { %v1210_v44 = vmax.f32 %v1144_v40, 0.0  ;;  %vm2086_vm2 = vcmp.lt.s32.totalorder %v3327_v37, 1 }
 0x22d   :  { %v1211_v46 = vmax.f32 %v1146_v42, 0.0 }
 0x22e   :  { %v1242_v47 = vpack.c.bf16 %v1210_v44, %v1208_v43 }
 0x22f   :  { %v1243_v48 = vpack.c.bf16 %v1211_v46, %v1209_v45 }
 0x231   :  { %1531 = vmatprep.mubr.bf16.mxu1 %v1243_v48 }
 0x232   :  { %1532 = vmatmul.mubr.bf16.gmra.mrb[60].mxu1 %v1242_v47 }
 0x255   :  { %v2234_v49 = vpop.f32.mrb[0].mxu1 }
 0x256   :  { %v2235_v50 = vpop.f32.mrb[1].mxu1 }
 0x257   :  { %v2236_v51 = vadd.f32 %v2235_v50, %v2234_v49  ;;  %v2237_v11 = vpop.f32.mrb[2].mxu1 }
 0x258   :  { %v2238_v52 = vpop.f32.mrb[3].mxu1 }
 0x259   :  { %v3300_v13 = vadd.f32 %v2236_v51, %v3297_v0  ;;  %v2239_v53 = vadd.f32 %v2238_v52, %v2237_v11 }
 0x25b   :  { %v1606_v55 = vand.u32 2147483647, %v3300_v13  ;;  %v3304_v56 = vadd.f32 %v2239_v53, %v3297_v0  ;;  %v1574_v46 = vmax.f32 %v3300_v13, 0.0 }
 0x25d   :  { %v1638_v58 = vsub.f32 0.0, %v1606_v55  ;;  %v1607_v59 = vand.u32 2147483647, %v3304_v56  ;;  %v1575_v51 = vmax.f32 %v3304_v56, 0.0 }
 0x25f   :  { %v1670_v60 = vmul.f32 1.442695, %v1638_v58  ;;  %v1639_v62 = vsub.f32 0.0, %v1607_v59 }
 0x260   :  { %v2240_v3 = vpop.f32.mrb[4].mxu1 }
 0x261   :  { %v2241_v5 = vpop.f32.mrb[5].mxu1  ;;  %2443 = vpow2.f32 %v1670_v60  ;;  %v1672_v4 = vmul.f32 1.442695, %v1639_v62 }
 0x262   :  { %v2242_v6 = vadd.f32 %v2241_v5, %v2240_v3  ;;  %v2243_v7 = vpop.f32.mrb[6].mxu1 }
 0x263   :  { %v2244_v9 = vpop.f32.mrb[7].mxu1  ;;  %2445 = vpow2.f32 %v1672_v4 }
 0x264   :  { %v3308_v10 = vadd.f32 %v2242_v6, %v3297_v0  ;;  %v2245_v8 = vadd.f32 %v2244_v9, %v2243_v7 }
 0x266   :  { %v1608_v16 = vand.u32 2147483647, %v3308_v10  ;;  %v3312_v12 = vadd.f32 %v2245_v8, %v3297_v0 }
 0x268   :  { %v1640_v14 = vsub.f32 0.0, %v1608_v16  ;;  %v1609_v15 = vand.u32 2147483647, %v3312_v12 }
 0x26a   :  { %v1674_v17 = vmul.f32 1.442695, %v1640_v14  ;;  %v1641_v18 = vsub.f32 0.0, %v1609_v15 }
 0x26b   :  { %v2246_v19 = vpop.f32.mrb[8].mxu1  ;;  %v2444_v20 = vpop.eup %2443 }
 0x26c   :  { %2447 = vpow2.f32 %v1674_v17  ;;  %v1676_v21 = vmul.f32 1.442695, %v1641_v18  ;;  %v2247_v22 = vpop.f32.mrb[9].mxu1  ;;  %v1734_v23 = vadd.f32 1.0, %v2444_v20  ;;  %v1737_v28 = vmul.f32 -0.5, %v2444_v20 }
 0x26d   :  { %v2248_v63 = vadd.f32 %v2247_v22, %v2246_v19  ;;  %v2249_v54 = vpop.f32.mrb[10].mxu1  ;;  %v2446_v25 = vpop.eup %2445  ;;  %v1740_v38 = vand.u32 2147483647, %v2444_v20 }
 0x26e   :  { %2449 = vpow2.f32 %v1676_v21  ;;  %v2250_v2 = vpop.f32.mrb[11].mxu1  ;;  %v1743_v57 = vadd.f32 1.0, %v2446_v25  ;;  %v1746_v32 = vmul.f32 -0.5, %v2446_v25  ;;  %v1738_v36 = vadd.f32 1.0, %v1737_v28 }
 0x26f   :  { %2451 = vlog2.f32 %v1734_v23  ;;  %v3316_v26 = vadd.f32 %v2248_v63, %v3297_v0  ;;  %v2251_v27 = vadd.f32 %v2250_v2, %v2249_v54  ;;  %v1749_v47 = vand.u32 2147483647, %v2446_v25 }
 0x270   :  { %2453 = vlog2.f32 %v1743_v57  ;;  %v1747_v41 = vadd.f32 1.0, %v1746_v32  ;;  %v1739_v50 = vmul.f32 %v2444_v20, %v1738_v36  ;;  %vm1741_vm0 = vcmp.lt.f32.partialorder %v1740_v38, 0.0004427343 }
 0x271   :  { %v1610_v30 = vand.u32 2147483647, %v3316_v26  ;;  %v3320_v31 = vadd.f32 %v2251_v27, %v3297_v0  ;;  %2455 = vtanh.f32 %v3300_v13  ;;  %vm1750_vm1 = vcmp.lt.f32.partialorder %v1749_v47, 0.0004427343 }
 0x272   :  { %2457 = vtanh.f32 %v3304_v56  ;;  %v1748_v13 = vmul.f32 %v2446_v25, %v1747_v41  ;;  %v1576_v32 = vmax.f32 %v3308_v10, 0.0 }
 0x273   :  { %v1642_v24 = vsub.f32 0.0, %v1610_v30  ;;  %v1611_v33 = vand.u32 2147483647, %v3320_v31 }
 0x275   :  { %v2252_v34 = vpop.f32.mrb[12].mxu1  ;;  %v1678_v29 = vmul.f32 1.442695, %v1642_v24  ;;  %v1643_v42 = vsub.f32 0.0, %v1611_v33 }
 0x276   :  { %v3323_v35 = vpop.eup %2447  ;;  %v2253_v1 = vpop.f32.mrb[13].mxu1 }
 0x277   :  { %v1752_v39 = vadd.f32 1.0, %v3323_v35  ;;  %v2254_v43 = vadd.f32 %v2253_v1, %v2252_v34  ;;  %v2255_v44 = vpop.f32.mrb[14].mxu1  ;;  %v1680_v52 = vmul.f32 1.442695, %v1643_v42  ;;  %v1755_v59 = vmul.f32 -0.5, %v3323_v35 }
 0x278   :  { %v3330_v40 = vpop.eup %2449  ;;  %v2256_v48 = vpop.f32.mrb[15].mxu1  ;;  %v1758_v17 = vand.u32 2147483647, %v3323_v35 }
 0x279   :  { %v2452_v45 = vpop.eup %2451  ;;  %2459 = vlog2.f32 %v1752_v39  ;;  %v1761_v61 = vadd.f32 1.0, %v3330_v40  ;;  %v3337_v53 = vadd.f32 %v2254_v43, %v3297_v0  ;;  %v1764_v3 = vmul.f32 -0.5, %v3330_v40 }
 0x27a   :  { %v1736_v49 = vmul.f32 0.6931472, %v2452_v45  ;;  %2461 = vpow2.f32 %v1678_v29  ;;  %v2454_v11 = vpop.eup %2453  ;;  %v2257_v5 = vadd.f32 %v2256_v48, %v2255_v44  ;;  %v1756_v8 = vadd.f32 1.0, %v1755_v59 }
 0x27b   :  { %2463 = vlog2.f32 %v1761_v61  ;;  %v1745_v58 = vmul.f32 0.6931472, %v2454_v11  ;;  %v1612_v62 = vand.u32 2147483647, %v3337_v53  ;;  %v2456_v9 = vpop.eup %2455  ;;  %v1765_v20 = vadd.f32 1.0, %v1764_v3 }
 0x27c   :  { %v1742_v55 = vsel %vm1741_vm0, %v1739_v50, %v1736_v49  ;;  %2465 = vpow2.f32 %v1680_v52  ;;  %v3345_v16 = vadd.f32 %v2257_v5, %v3297_v0  ;;  %v2458_v19 = vpop.eup %2457  ;;  %v1767_v63 = vand.u32 2147483647, %v3330_v40 }
 0x27d   :  { %v2022_v60 = vadd.f32 %v1742_v55, %v1574_v46  ;;  %v1751_v56 = vsel %vm1750_vm1, %v1748_v13, %v1745_v58  ;;  %v1644_v7 = vsub.f32 0.0, %v1612_v62  ;;  %2467 = vtanh.f32 %v3308_v10 }
 0x27e   :  { %v2023_v6 = vadd.f32 %v1751_v56, %v1575_v51  ;;  %2469 = vtanh.f32 %v3312_v12  ;;  %v1613_v21 = vand.u32 2147483647, %v3345_v16  ;;  %v1757_v57 = vmul.f32 %v3323_v35, %v1756_v8 }
 0x27f   :  { %v2054_v4 = vadd.f32 1e-09, %v2022_v60  ;;  %v1682_v18 = vmul.f32 1.442695, %v1644_v7  ;;  %vm1759_vm3 = vcmp.lt.f32.partialorder %v1758_v17, 0.0004427343  ;;  %v1766_v38 = vmul.f32 %v3330_v40, %v1765_v20 }
 0x280   :  { %v2055_v15 = vadd.f32 1e-09, %v2023_v6  ;;  %v1645_v27 = vsub.f32 0.0, %v1613_v21  ;;  %v1577_v35 = vmax.f32 %v3312_v12, 0.0  ;;  %vm1768_vm4 = vcmp.lt.f32.partialorder %v1767_v63, 0.0004427343 }
 0x281   :  { %v2087_v14 = vsel %vm2086_vm2, %v2456_v9, %v2054_v4  ;;  %2471 = vpow2.f32 %v1682_v18 }
 0x282   :  { %2119 = vst [vmem:[#allocation5] sm:$0xff] %v2087_v14  ;;  %v2088_v23 = vsel %vm2086_vm2, %v2458_v19, %v2055_v15  ;;  %v1684_v39 = vmul.f32 1.442695, %v1645_v27 }
 0x283   :  { %v2460_v22 = vpop.eup %2459  ;;  %v2258_v54 = vpop.f32.mrb[16].mxu1  ;;  %2120 = vst [vmem:[#allocation5 + $0x8] sm:$0xff] %v2088_v23  ;;  %v1578_v23 = vmax.f32 %v3316_v26, 0.0 }
 0x284   :  { %v3355_v25 = vpop.eup %2461  ;;  %v1754_v2 = vmul.f32 0.6931472, %v2460_v22  ;;  %v2259_v28 = vpop.f32.mrb[17].mxu1 }
 0x285   :  { %v2464_v30 = vpop.eup %2463  ;;  %v1770_v24 = vadd.f32 1.0, %v3355_v25  ;;  %v2260_v33 = vadd.f32 %v2259_v28, %v2258_v54  ;;  %v2261_v34 = vpop.f32.mrb[18].mxu1  ;;  %v1773_v47 = vmul.f32 -0.5, %v3355_v25  ;;  %v1776_v55 = vand.u32 2147483647, %v3355_v25 }
 0x286   :  { %v1760_v36 = vsel %vm1759_vm3, %v1757_v57, %v1754_v2  ;;  %v1763_v1 = vmul.f32 0.6931472, %v2464_v30  ;;  %v2262_v29 = vpop.f32.mrb[19].mxu1  ;;  %v3361_v41 = vpop.eup %2465 }
 0x287   :  { %v2024_v42 = vadd.f32 %v1760_v36, %v1576_v32  ;;  %2473 = vlog2.f32 %v1770_v24  ;;  %v1779_v10 = vadd.f32 1.0, %v3361_v41  ;;  %v2468_v46 = vpop.eup %2467  ;;  %v3367_v40 = vadd.f32 %v2260_v33, %v3297_v0 }
 0x288   :  { %v1769_v43 = vsel %vm1768_vm4, %v1766_v38, %v1763_v1  ;;  %2475 = vpow2.f32 %v1684_v39  ;;  %v2263_v12 = vadd.f32 %v2262_v29, %v2261_v34  ;;  %v2470_v49 = vpop.eup %2469  ;;  %v1782_v50 = vmul.f32 -0.5, %v3361_v41 }
 0x289   :  { %v2056_v44 = vadd.f32 1e-09, %v2024_v42  ;;  %v2025_v45 = vadd.f32 %v1769_v43, %v1577_v35  ;;  %2477 = vlog2.f32 %v1779_v10  ;;  %v1614_v51 = vand.u32 2147483647, %v3367_v40 }
 0x28a   :  { %v3379_v58 = vadd.f32 %v2263_v12, %v3297_v0  ;;  %2479 = vtanh.f32 %v3316_v26  ;;  %v1774_v59 = vadd.f32 1.0, %v1773_v47  ;;  %v1783_v6 = vadd.f32 1.0, %v1782_v50 }
 0x28b   :  { %v2089_v61 = vsel %vm2086_vm2, %v2468_v46, %v2056_v44  ;;  %v2057_v48 = vadd.f32 1e-09, %v2025_v45  ;;  %v3373_v11 = vpop.eup %2471  ;;  %v1646_v62 = vsub.f32 0.0, %v1614_v51  ;;  %2481 = vtanh.f32 %v3320_v31 }
 0x28c   :  { %2121 = vst [vmem:[#allocation5 + $0x10] sm:$0xff] %v2089_v61  ;;  %v1788_v60 = vadd.f32 1.0, %v3373_v11  ;;  %v1615_v3 = vand.u32 2147483647, %v3379_v58  ;;  %vm3385_vm5 = vcmp.lt.f32.partialorder %v1776_v55, 0.0004427343  ;;  %v1775_v20 = vmul.f32 %v3355_v25, %v1774_v59 }
 0x28d   :  { %v2090_v52 = vsel %vm2086_vm2, %v2470_v49, %v2057_v48  ;;  %v2264_v13 = vpop.f32.mrb[20].mxu1  ;;  %v1686_v7 = vmul.f32 1.442695, %v1646_v62  ;;  %v1785_v21 = vand.u32 2147483647, %v3361_v41  ;;  %v1791_v63 = vmul.f32 -0.5, %v3373_v11 }
 0x28e   :  { %2122 = vst [vmem:[#allocation5 + $0x18] sm:$0xff] %v2090_v52  ;;  %v2265_v56 = vpop.f32.mrb[21].mxu1  ;;  %2483 = vlog2.f32 %v1788_v60  ;;  %v1647_v15 = vsub.f32 0.0, %v1615_v3  ;;  %v1784_v28 = vmul.f32 %v3361_v41, %v1783_v6  ;;  %v1579_v26 = vmax.f32 %v3320_v31, 0.0 }
 0x28f   :  { %v2266_v5 = vadd.f32 %v2265_v56, %v2264_v13  ;;  %v2267_v4 = vpop.f32.mrb[22].mxu1  ;;  %2485 = vpow2.f32 %v1686_v7  ;;  %vm1786_vm6 = vcmp.lt.f32.partialorder %v1785_v21, 0.0004427343  ;;  %v1792_v1 = vadd.f32 1.0, %v1791_v63 }
 0x290   :  { %v2268_v9 = vpop.f32.mrb[23].mxu1  ;;  %v1688_v54 = vmul.f32 1.442695, %v1647_v15  ;;  %2487 = vtanh.f32 %v3337_v53  ;;  %v1794_v41 = vand.u32 2147483647, %v3373_v11  ;;  %v1580_v49 = vmax.f32 %v3337_v53, 0.0 }
 0x291   :  { %v2474_v8 = vpop.eup %2473  ;;  %v3390_v17 = vadd.f32 %v2266_v5, %v3297_v0  ;;  %v2269_v18 = vadd.f32 %v2268_v9, %v2267_v4  ;;  %v1793_v46 = vmul.f32 %v3373_v11, %v1792_v1  ;;  %v1581_v7 = vmax.f32 %v3345_v16, 0.0 }
 0x292   :  { %v1772_v19 = vmul.f32 0.6931472, %v2474_v8  ;;  %v3394_v22 = vpop.eup %2475  ;;  %2489 = vpow2.f32 %v1688_v54  ;;  %vm1795_vm7 = vcmp.lt.f32.partialorder %v1794_v41, 0.0004427343 }
 0x293   :  { %v1616_v2 = vand.u32 2147483647, %v3390_v17  ;;  %v2478_v57 = vpop.eup %2477  ;;  %v1797_v25 = vadd.f32 1.0, %v3394_v22  ;;  %v3406_v33 = vadd.f32 %v2269_v18, %v3297_v0  ;;  %v1800_v43 = vmul.f32 -0.5, %v3394_v22 }
 0x294   :  { %v1778_v27 = vsel %vm3385_vm5, %v1775_v20, %v1772_v19  ;;  %v1781_v32 = vmul.f32 0.6931472, %v2478_v57  ;;  %v2480_v39 = vpop.eup %2479  ;;  %v1803_v60 = vand.u32 2147483647, %v3394_v22 }
 0x295   :  { %v2026_v30 = vadd.f32 %v1778_v27, %v1578_v23  ;;  %v1648_v24 = vsub.f32 0.0, %v1616_v2  ;;  %2491 = vlog2.f32 %v1797_v25  ;;  %v2482_v42 = vpop.eup %2481  ;;  %v1617_v31 = vand.u32 2147483647, %v3406_v33 }
 0x296   :  { %v1787_v36 = vsel %vm1786_vm6, %v1784_v28, %v1781_v32  ;;  %v1801_v52 = vadd.f32 1.0, %v1800_v43  ;;  %vm1804_vm8 = vcmp.lt.f32.partialorder %v1803_v60, 0.0004427343 }
 0x297   :  { %v2058_v34 = vadd.f32 1e-09, %v2026_v30  ;;  %v1690_v38 = vmul.f32 1.442695, %v1648_v24  ;;  %v2027_v29 = vadd.f32 %v1787_v36, %v1579_v26  ;;  %v1649_v47 = vsub.f32 0.0, %v1617_v31 }
 0x298   :  { %v2484_v10 = vpop.eup %2483  ;;  %v1802_v14 = vmul.f32 %v3394_v22, %v1801_v52 }
 0x299   :  { %v2091_v35 = vsel %vm2086_vm2, %v2480_v39, %v2058_v34  ;;  %2493 = vpow2.f32 %v1690_v38  ;;  %v2059_v44 = vadd.f32 1e-09, %v2027_v29  ;;  %v1790_v45 = vmul.f32 0.6931472, %v2484_v10  ;;  %v3414_v48 = vpop.eup %2485 }
 0x29a   :  { %2123 = vst [vmem:[#allocation5 + $0x20] sm:$0xff] %v2091_v35  ;;  %2495 = vtanh.f32 %v3345_v16  ;;  %v1806_v55 = vadd.f32 1.0, %v3414_v48  ;;  %v2488_v11 = vpop.eup %2487  ;;  %v1692_v62 = vmul.f32 1.442695, %v1649_v47  ;;  %v1809_v19 = vmul.f32 -0.5, %v3414_v48 }
 0x29b   :  { %v2270_v61 = vpop.f32.mrb[24].mxu1  ;;  %v2092_v12 = vsel %vm2086_vm2, %v2482_v42, %v2059_v44  ;;  %v1796_v51 = vsel %vm1795_vm7, %v1793_v46, %v1790_v45  ;;  %v1812_v32 = vand.u32 2147483647, %v3414_v48  ;;  %v1582_v45 = vmax.f32 %v3367_v40, 0.0 }
 0x29c   :  { %v2271_v50 = vpop.f32.mrb[25].mxu1  ;;  %2124 = vst [vmem:[#allocation5 + $0x28] sm:$0xff] %v2092_v12  ;;  %v2028_v59 = vadd.f32 %v1796_v51, %v1580_v49  ;;  %v3422_v5 = vpop.eup %2489  ;;  %2497 = vlog2.f32 %v1806_v55  ;;  %v1810_v28 = vadd.f32 1.0, %v1809_v19 }
 0x29d   :  { %v2273_v13 = vpop.f32.mrb[26].mxu1  ;;  %v2272_v56 = vadd.f32 %v2271_v50, %v2270_v61  ;;  %v1815_v9 = vadd.f32 1.0, %v3422_v5  ;;  %2499 = vpow2.f32 %v1692_v62  ;;  %v1818_v21 = vmul.f32 -0.5, %v3422_v5 }
 0x29e   :  { %v2274_v3 = vpop.f32.mrb[27].mxu1  ;;  %v2060_v6 = vadd.f32 1e-09, %v2028_v59  ;;  %v1811_v43 = vmul.f32 %v3414_v48, %v1810_v28  ;;  %v1821_v31 = vand.u32 2147483647, %v3422_v5 }
 0x29f   :  { %v2275_v53 = vadd.f32 %v2274_v3, %v2273_v13  ;;  %v2492_v4 = vpop.eup %2491  ;;  %v3428_v15 = vadd.f32 %v2272_v56, %v3297_v0  ;;  %2501 = vlog2.f32 %v1815_v9  ;;  %v1819_v24 = vadd.f32 1.0, %v1818_v21 }
 0x2a0   :  { %v1799_v8 = vmul.f32 0.6931472, %v2492_v4  ;;  %v2093_v18 = vsel %vm2086_vm2, %v2488_v11, %v2060_v6  ;;  %2503 = vtanh.f32 %v3367_v40  ;;  %vm1813_vm9 = vcmp.lt.f32.partialorder %v1812_v32, 0.0004427343 }
 0x2a1   :  { %2125 = vst [vmem:[#allocation5 + $0x30] sm:$0xff] %v2093_v18  ;;  %v1618_v23 = vand.u32 2147483647, %v3428_v15  ;;  %v3440_v2 = vadd.f32 %v2275_v53, %v3297_v0  ;;  %v1820_v12 = vmul.f32 %v3422_v5, %v1819_v24  ;;  %v1583_v40 = vmax.f32 %v3379_v58, 0.0 }
 0x2a2   :  { %v1805_v16 = vsel %vm1804_vm8, %v1802_v14, %v1799_v8  ;;  %vm1822_vm10 = vcmp.lt.f32.partialorder %v1821_v31, 0.0004427343  ;;  %v1584_v14 = vmax.f32 %v3390_v17, 0.0 }
 0x2a3   :  { %v3433_v20 = vpop.eup %2493  ;;  %v2029_v22 = vadd.f32 %v1805_v16, %v1581_v7  ;;  %v1650_v54 = vsub.f32 0.0, %v1618_v23  ;;  %v1619_v38 = vand.u32 2147483647, %v3440_v2 }
 0x2a4   :  { %v1824_v63 = vadd.f32 1.0, %v3433_v20  ;;  %v2496_v30 = vpop.eup %2495  ;;  %v1827_v1 = vmul.f32 -0.5, %v3433_v20  ;;  %v1830_v13 = vand.u32 2147483647, %v3433_v20 }
 0x2a5   :  { %v2276_v57 = vpop.f32.mrb[28].mxu1  ;;  %v2061_v27 = vadd.f32 1e-09, %v2029_v22  ;;  %v1694_v26 = vmul.f32 1.442695, %v1650_v54  ;;  %v1651_v10 = vsub.f32 0.0, %v1619_v38 }
 0x2a6   :  { %2505 = vlog2.f32 %v1824_v63  ;;  %v2277_v25 = vpop.f32.mrb[29].mxu1  ;;  %v2498_v41 = vpop.eup %2497  ;;  %v1828_v49 = vadd.f32 1.0, %v1827_v1  ;;  %vm1831_vm11 = vcmp.lt.f32.partialorder %v1830_v13, 0.0004427343 }
 0x2a7   :  { %2507 = vtanh.f32 %v3379_v58  ;;  %v2279_v34 = vpop.f32.mrb[30].mxu1  ;;  %v2094_v36 = vsel %vm2086_vm2, %v2496_v30, %v2061_v27  ;;  %v2278_v39 = vadd.f32 %v2277_v25, %v2276_v57  ;;  %v1808_v35 = vmul.f32 0.6931472, %v2498_v41  ;;  %v3450_v44 = vpop.eup %2499 }
 0x2a8   :  { %v2280_v29 = vpop.f32.mrb[31].mxu1  ;;  %2126 = vst [vmem:[#allocation5 + $0x38] sm:$0xff] %v2094_v36  ;;  %2509 = vpow2.f32 %v1694_v26  ;;  %v1833_v48 = vadd.f32 1.0, %v3450_v44  ;;  %v1696_v52 = vmul.f32 1.442695, %v1651_v10  ;;  %v1829_v5 = vmul.f32 %v3433_v20, %v1828_v49 }
 0x2a9   :  { %v2281_v42 = vadd.f32 %v2280_v29, %v2279_v34  ;;  %2511 = vtanh.f32 %v3390_v17  ;;  %v3455_v46 = vadd.f32 %v2278_v39, %v3297_v0  ;;  %v2502_v47 = vpop.eup %2501  ;;  %v1814_v61 = vsel %vm1813_vm9, %v1811_v43, %v1808_v35 }
 0x2aa   :  { %v2030_v50 = vadd.f32 %v1814_v61, %v1582_v45  ;;  %v1817_v51 = vmul.f32 0.6931472, %v2502_v47  ;;  %2513 = vlog2.f32 %v1833_v48  ;;  %v2504_v11 = vpop.eup %2503  ;;  %v1836_v53 = vmul.f32 -0.5, %v3450_v44 }
 0x2ab   :  { %v3460_v55 = vadd.f32 %v2281_v42, %v3297_v0  ;;  %2515 = vpow2.f32 %v1696_v52  ;;  %v1620_v62 = vand.u32 2147483647, %v3455_v46  ;;  %v1839_v32 = vand.u32 2147483647, %v3450_v44 }
 0x2ac   :  { %v2062_v59 = vadd.f32 1e-09, %v2030_v50  ;;  %v1823_v60 = vsel %vm1822_vm10, %v1820_v12, %v1817_v51  ;;  %2517 = vtanh.f32 %v3406_v33  ;;  %v1837_v27 = vadd.f32 1.0, %v1836_v53 }
 0x2ad   :  { %v2031_v3 = vadd.f32 %v1823_v60, %v1583_v40  ;;  %v1652_v7 = vsub.f32 0.0, %v1620_v62  ;;  %v1621_v9 = vand.u32 2147483647, %v3460_v55  ;;  %v1585_v35 = vmax.f32 %v3406_v33, 0.0 }
 0x2ae   :  { %v2095_v58 = vsel %vm2086_vm2, %v2504_v11, %v2062_v59  ;;  %v1838_v41 = vmul.f32 %v3450_v44, %v1837_v27  ;;  %vm1840_vm12 = vcmp.lt.f32.partialorder %v1839_v32, 0.0004427343 }
 0x2af   :  { %2127 = vst [vmem:[#allocation5 + $0x40] sm:$0xff] %v2095_v58  ;;  %v2063_v8 = vadd.f32 1e-09, %v2031_v3  ;;  %v1698_v16 = vmul.f32 1.442695, %v1652_v7  ;;  %v1653_v20 = vsub.f32 0.0, %v1621_v9 }
 0x2b0   :  { %v2506_v56 = vpop.eup %2505  ;;  %v1586_v9 = vmax.f32 %v3428_v15, 0.0 }
 0x2b1   :  { %v2508_v4 = vpop.eup %2507  ;;  %v1826_v6 = vmul.f32 0.6931472, %v2506_v56  ;;  %2519 = vpow2.f32 %v1698_v16  ;;  %v1700_v17 = vmul.f32 1.442695, %v1653_v20 }
 0x2b2   :  { %v3471_v18 = vpop.eup %2509  ;;  %v2096_v23 = vsel %vm2086_vm2, %v2508_v4, %v2063_v8 }
 0x2b3   :  { %v1832_v19 = vsel %vm1831_vm11, %v1829_v5, %v1826_v6  ;;  %v2282_v21 = vpop.f32.mrb[32].mxu1  ;;  %v1842_v63 = vadd.f32 1.0, %v3471_v18  ;;  %v2512_v57 = vpop.eup %2511  ;;  %2128 = vst [vmem:[#allocation5 + $0x48] sm:$0xff] %v2096_v23  ;;  %v1845_v38 = vmul.f32 -0.5, %v3471_v18  ;;  %v1848_v33 = vand.u32 2147483647, %v3471_v18 }
 0x2b4   :  { %v2032_v22 = vadd.f32 %v1832_v19, %v1584_v14  ;;  %v2283_v54 = vpop.f32.mrb[33].mxu1  ;;  %v2514_v36 = vpop.eup %2513 }
 0x2b5   :  { %v2284_v28 = vadd.f32 %v2283_v54, %v2282_v21  ;;  %v2285_v25 = vpop.f32.mrb[34].mxu1  ;;  %2521 = vlog2.f32 %v1842_v63  ;;  %v2516_v39 = vpop.eup %2515  ;;  %v1835_v29 = vmul.f32 0.6931472, %v2514_v36  ;;  %v1846_v61 = vadd.f32 1.0, %v1845_v38 }
 0x2b6   :  { %v2064_v30 = vadd.f32 1e-09, %v2032_v22  ;;  %v2286_v24 = vpop.f32.mrb[35].mxu1  ;;  %2523 = vpow2.f32 %v1700_v17  ;;  %v1851_v43 = vadd.f32 1.0, %v2516_v39  ;;  %v2518_v48 = vpop.eup %2517  ;;  %v1854_v40 = vmul.f32 -0.5, %v2516_v39 }
 0x2b7   :  { %v3479_v26 = vadd.f32 %v2284_v28, %v3297_v0  ;;  %v2287_v34 = vadd.f32 %v2286_v24, %v2285_v25  ;;  %v1841_v10 = vsel %vm1840_vm12, %v1838_v41, %v1835_v29  ;;  %v1847_v56 = vmul.f32 %v3471_v18, %v1846_v61 }
 0x2b8   :  { %v2097_v1 = vsel %vm2086_vm2, %v2512_v57, %v2064_v30  ;;  %v2033_v47 = vadd.f32 %v1841_v10, %v1585_v35  ;;  %2525 = vlog2.f32 %v1851_v43  ;;  %vm1849_vm13 = vcmp.lt.f32.partialorder %v1848_v33, 0.0004427343 }
 0x2b9   :  { %2129 = vst [vmem:[#allocation5 + $0x50] sm:$0xff] %v2097_v1  ;;  %v1622_v42 = vand.u32 2147483647, %v3479_v26  ;;  %v3488_v31 = vadd.f32 %v2287_v34, %v3297_v0  ;;  %2527 = vtanh.f32 %v3428_v15  ;;  %v1855_v18 = vadd.f32 1.0, %v1854_v40 }
 0x2ba   :  { %v2065_v50 = vadd.f32 1e-09, %v2033_v47  ;;  %v1857_v16 = vand.u32 2147483647, %v2516_v39  ;;  %v1587_v25 = vmax.f32 %v3440_v2, 0.0 }
 0x2bb   :  { %v1654_v45 = vsub.f32 0.0, %v1622_v42  ;;  %v1623_v49 = vand.u32 2147483647, %v3488_v31  ;;  %v3493_v52 = vpop.eup %2519  ;;  %v1856_v57 = vmul.f32 %v2516_v39, %v1855_v18 }
 0x2bc   :  { %v2098_v62 = vsel %vm2086_vm2, %v2518_v48, %v2065_v50  ;;  %v1860_v3 = vadd.f32 1.0, %v3493_v52  ;;  %v1863_v20 = vmul.f32 -0.5, %v3493_v52  ;;  %vm1858_vm14 = vcmp.lt.f32.partialorder %v1857_v16, 0.0004427343 }
 0x2bd   :  { %v1702_v12 = vmul.f32 1.442695, %v1654_v45  ;;  %v2288_v44 = vpop.f32.mrb[36].mxu1  ;;  %v1655_v13 = vsub.f32 0.0, %v1623_v49  ;;  %2130 = vst [vmem:[#allocation5 + $0x58] sm:$0xff] %v2098_v62  ;;  %v1589_v45 = vmax.f32 %v3460_v55, 0.0 }
 0x2be   :  { %v2289_v51 = vpop.f32.mrb[37].mxu1  ;;  %v1864_v34 = vadd.f32 1.0, %v1863_v20  ;;  %v1866_v39 = vand.u32 2147483647, %v3493_v52 }
 0x2bf   :  { %2529 = vpow2.f32 %v1702_v12  ;;  %v2290_v11 = vadd.f32 %v2289_v51, %v2288_v44  ;;  %v2291_v59 = vpop.f32.mrb[38].mxu1  ;;  %v2522_v60 = vpop.eup %2521  ;;  %v1704_v58 = vmul.f32 1.442695, %v1655_v13 }
 0x2c0   :  { %2531 = vtanh.f32 %v3440_v2  ;;  %v2292_v5 = vpop.f32.mrb[39].mxu1  ;;  %v3500_v53 = vpop.eup %2523  ;;  %v1844_v4 = vmul.f32 0.6931472, %v2522_v60  ;;  %v1588_v2 = vmax.f32 %v3455_v46, 0.0  ;;  %v1865_v44 = vmul.f32 %v3493_v52, %v1864_v34 }
 0x2c1   :  { %v3503_v6 = vadd.f32 %v2290_v11, %v3297_v0  ;;  %v2293_v7 = vadd.f32 %v2292_v5, %v2291_v59  ;;  %2533 = vlog2.f32 %v1860_v3  ;;  %v1869_v8 = vadd.f32 1.0, %v3500_v53 }
 0x2c2   :  { %v1850_v14 = vsel %vm1849_vm13, %v1847_v56, %v1844_v4  ;;  %2535 = vpow2.f32 %v1704_v58  ;;  %v2526_v23 = vpop.eup %2525  ;;  %v1872_v27 = vmul.f32 -0.5, %v3500_v53  ;;  %v1875_v47 = vand.u32 2147483647, %v3500_v53 }
 0x2c3   :  { %v2034_v19 = vadd.f32 %v1850_v14, %v1586_v9  ;;  %2537 = vlog2.f32 %v1869_v8  ;;  %v1624_v21 = vand.u32 2147483647, %v3503_v6  ;;  %v3510_v63 = vadd.f32 %v2293_v7, %v3297_v0  ;;  %v2528_v15 = vpop.eup %2527 }
 0x2c4   :  { %v1853_v54 = vmul.f32 0.6931472, %v2526_v23  ;;  %2539 = vtanh.f32 %v3455_v46  ;;  %v1873_v41 = vadd.f32 1.0, %v1872_v27  ;;  %vm1867_vm15 = vcmp.lt.f32.partialorder %v1866_v39, 0.0004427343 }
 0x2c5   :  { %v2066_v22 = vadd.f32 1e-09, %v2034_v19  ;;  %v1656_v17 = vsub.f32 0.0, %v1624_v21  ;;  %v1625_v30 = vand.u32 2147483647, %v3510_v63  ;;  %2541 = vtanh.f32 %v3460_v55 }
 0x2c6   :  { %v1859_v24 = vsel %vm1858_vm14, %v1856_v57, %v1853_v54  ;;  %v1874_v60 = vmul.f32 %v3500_v53, %v1873_v41  ;;  %vm1876_vm0 = vcmp.lt.f32.partialorder %v1875_v47, 0.0004427343 }
 0x2c7   :  { %v2099_v28 = vsel %vm2086_vm2, %v2528_v15, %v2066_v22  ;;  %v1706_v36 = vmul.f32 1.442695, %v1656_v17  ;;  %v2035_v38 = vadd.f32 %v1859_v24, %v1587_v25  ;;  %v1657_v42 = vsub.f32 0.0, %v1625_v30 }
 0x2c8   :  { %2131 = vst [vmem:[#allocation5 + $0x60] sm:$0xff] %v2099_v28 }
 0x2c9   :  { %v3517_v32 = vpop.eup %2529  ;;  %2543 = vpow2.f32 %v1706_v36  ;;  %v2067_v10 = vadd.f32 1e-09, %v2035_v38  ;;  %v1708_v48 = vmul.f32 1.442695, %v1657_v42 }
 0x2ca   :  { %v2532_v1 = vpop.eup %2531  ;;  %v1878_v29 = vadd.f32 1.0, %v3517_v32  ;;  %v1881_v40 = vmul.f32 -0.5, %v3517_v32  ;;  %v1884_v16 = vand.u32 2147483647, %v3517_v32 }
 0x2cb   :  { %v2294_v35 = vpop.f32.mrb[40].mxu1  ;;  %v2534_v43 = vpop.eup %2533  ;;  %v2100_v51 = vsel %vm2086_vm2, %v2532_v1, %v2067_v10  ;;  %v1590_v1 = vmax.f32 %v3479_v26, 0.0 }
 0x2cc   :  { %2545 = vlog2.f32 %v1878_v29  ;;  %v2295_v61 = vpop.f32.mrb[41].mxu1  ;;  %v3526_v12 = vpop.eup %2535  ;;  %v1862_v49 = vmul.f32 0.6931472, %v2534_v43  ;;  %2132 = vst [vmem:[#allocation5 + $0x68] sm:$0xff] %v2100_v51  ;;  %v1882_v58 = vadd.f32 1.0, %v1881_v40  ;;  %v1591_v43 = vmax.f32 %v3488_v31, 0.0 }
 0x2cd   :  { %v2296_v50 = vadd.f32 %v2295_v61, %v2294_v35  ;;  %v2297_v46 = vpop.f32.mrb[42].mxu1  ;;  %v2538_v33 = vpop.eup %2537  ;;  %v1887_v55 = vadd.f32 1.0, %v3526_v12  ;;  %2547 = vpow2.f32 %v1708_v48  ;;  %v1890_v7 = vmul.f32 -0.5, %v3526_v12  ;;  %v3569_v40 = vld [vmem:[%s3720_s6] ss:$0 sm:$0xff]  ;;  %s2689_s6 = smov [#allocation5]  }
 0x2ce   :  { %v2298_v13 = vpop.f32.mrb[43].mxu1  ;;  %v1868_v11 = vsel %vm1867_vm15, %v1865_v44, %v1862_v49  ;;  %v1871_v59 = vmul.f32 0.6931472, %v2538_v33  ;;  %v2540_v9 = vpop.eup %2539  ;;  %v1883_v57 = vmul.f32 %v3517_v32, %v1882_v58  ;;  %vm1885_vm1 = vcmp.lt.f32.partialorder %v1884_v16, 0.0004427343  ;;  %s2156_s28 = sshll.u32 %s2689_s6, 4  ;;  %s2157_s28 = int_to_ptr.vmem [resolvable:$true] %s2156_s28 }
 0x2cf   :  { %v2036_v52 = vadd.f32 %v1868_v11, %v1588_v2  ;;  %2549 = vlog2.f32 %v1887_v55  ;;  %v3535_v62 = vadd.f32 %v2296_v50, %v3297_v0  ;;  %v2299_v3 = vadd.f32 %v2298_v13, %v2297_v46  ;;  %v2542_v14 = vpop.eup %2541  ;;  %s2658_s29 = scalar_lea.vmem %s2157_s28, 4096  ;;  %p2663_p9 = scmp.lt.s32.totalorder %s2157_s28, %s2157_s28 }
 0x2d0   :  { %v1877_v56 = vsel %vm1876_vm0, %v1874_v60, %v1871_v59  ;;  %2551 = vtanh.f32 %v3479_v26  ;;  %v1891_v27 = vadd.f32 1.0, %v1890_v7  ;;  %v1893_v38 = vand.u32 2147483647, %v3526_v12  ;;  %p2659_p8 = scmp.ne.s32.totalorder %s2157_s28, %s2658_s29  ;;  %p2664_p10 = scmp.lt.s32.totalorder %s2658_s29, %s2658_s29 }
 0x2d1   :  { %v2068_v5 = vadd.f32 1e-09, %v2036_v52  ;;  %v2037_v4 = vadd.f32 %v1877_v56, %v1589_v45  ;;  %v1626_v8 = vand.u32 2147483647, %v3535_v62  ;;  %v3541_v53 = vadd.f32 %v2299_v3, %v3297_v0 }
 0x2d2   :  { %2553 = vtanh.f32 %v3488_v31  ;;  %v1892_v26 = vmul.f32 %v3526_v12, %v1891_v27  ;;  %vm1894_vm3 = vcmp.lt.f32.partialorder %v1893_v38, 0.0004427343  ;;  %v1593_v27 = vmax.f32 %v3510_v63, 0.0  ;;  %p2665_p11 = por %p2664_p10, %p2663_p9 }
 0x2d3   :  { %v2101_v18 = vsel %vm2086_vm2, %v2540_v9, %v2068_v5  ;;  %v2069_v19 = vadd.f32 1e-09, %v2037_v4  ;;  %v3546_v20 = vpop.eup %2543  ;;  %v1658_v21 = vsub.f32 0.0, %v1626_v8  ;;  %v1627_v23 = vand.u32 2147483647, %v3541_v53 }
 0x2d4   :  { %2133 = vst [vmem:[#allocation5 + $0x70] sm:$0xff] %v2101_v18  ;;  %v1896_v17 = vadd.f32 1.0, %v3546_v20  ;;  %v1899_v47 = vmul.f32 -0.5, %v3546_v20  ;;  %v1902_v11 = vand.u32 2147483647, %v3546_v20  ;;  %p2666_p12 = pnand %p2665_p11, %p2659_p8 }
 0x2d5   :  { %v2300_v22 = vpop.f32.mrb[44].mxu1  ;;  %v2102_v54 = vsel %vm2086_vm2, %v2542_v14, %v2069_v19  ;;  %v1710_v30 = vmul.f32 1.442695, %v1658_v21  ;;  %v1659_v24 = vsub.f32 0.0, %v1627_v23  ;;  %v1592_v14 = vmax.f32 %v3503_v6, 0.0 }
 0x2d6   :  { %v2546_v15 = vpop.eup %2545  ;;  %v2301_v28 = vpop.f32.mrb[45].mxu1  ;;  %2134 = vst [vmem:[#allocation5 + $0x78] sm:$0xff] %v2102_v54  ;;  %2555 = vlog2.f32 %v1896_v17  ;;  %v1900_v12 = vadd.f32 1.0, %v1899_v47  ;;  %vm1903_vm4 = vcmp.lt.f32.partialorder %v1902_v11, 0.0004427343 }
 0x2d7   :  { %v1880_v25 = vmul.f32 0.6931472, %v2546_v15  ;;  %v2302_v34 = vadd.f32 %v2301_v28, %v2300_v22  ;;  %v2303_v36 = vpop.f32.mrb[46].mxu1  ;;  %v2548_v29 = vpop.eup %2547  ;;  %2557 = vpow2.f32 %v1710_v30  ;;  %v1712_v32 = vmul.f32 1.442695, %v1659_v24 }
 0x2d8   :  { %v2304_v39 = vpop.f32.mrb[47].mxu1  ;;  %v1905_v10 = vadd.f32 1.0, %v2548_v29  ;;  %v1908_v51 = vmul.f32 -0.5, %v2548_v29  ;;  %v1911_v3 = vand.u32 2147483647, %v2548_v29  ;;  %v1901_v58 = vmul.f32 %v3546_v20, %v1900_v12 }
 0x2d9   :  { %v1886_v2 = vsel %vm1885_vm1, %v1883_v57, %v1880_v25  ;;  %v3557_v41 = vadd.f32 %v2302_v34, %v3297_v0  ;;  %v2550_v42 = vpop.eup %2549  ;;  %2559 = vpow2.f32 %v1712_v32  ;;  %v2305_v0 = vadd.f32 %v2304_v39, %v2303_v36 }
 0x2da   :  { %v2038_v35 = vadd.f32 %v1886_v2, %v1590_v1  ;;  %v1889_v45 = vmul.f32 0.6931472, %v2550_v42  ;;  %2561 = vlog2.f32 %v1905_v10  ;;  %v2552_v44 = vpop.eup %2551  ;;  %v1909_v7 = vadd.f32 1.0, %v1908_v51 }
 0x2db   :  { %v1628_v49 = vand.u32 2147483647, %v3557_v41  ;;  %2563 = vtanh.f32 %v3503_v6  ;;  %v3572_v55 = vadd.f32 %v3569_v40, %v2305_v0  ;;  %vm1912_vm5 = vcmp.lt.f32.partialorder %v1911_v3, 0.0004427343 }
 0x2dc   :  { %v2070_v61 = vadd.f32 1e-09, %v2038_v35  ;;  %v1895_v48 = vsel %vm1894_vm3, %v1892_v26, %v1889_v45  ;;  %v2554_v33 = vpop.eup %2553  ;;  %2565 = vtanh.f32 %v3510_v63  ;;  %v1910_v28 = vmul.f32 %v2548_v29, %v1909_v7 }
 0x2dd   :  { %v2039_v46 = vadd.f32 %v1895_v48, %v1591_v43  ;;  %v1660_v31 = vsub.f32 0.0, %v1628_v49  ;;  %v1629_v60 = vand.u32 2147483647, %v3572_v55 }
 0x2de   :  { %v2103_v50 = vsel %vm2086_vm2, %v2552_v44, %v2070_v61 }
 0x2df   :  { %2135 = vst [vmem:[#allocation5 + $0x80] sm:$0xff] %v2103_v50  ;;  %v2071_v13 = vadd.f32 1e-09, %v2039_v46  ;;  %v1714_v59 = vmul.f32 1.442695, %v1660_v31  ;;  %v1661_v9 = vsub.f32 0.0, %v1629_v60 }
 0x2e0   :  { %v2556_v52 = vpop.eup %2555 }
 0x2e1   :  { %v2104_v56 = vsel %vm2086_vm2, %v2554_v33, %v2071_v13  ;;  %2567 = vpow2.f32 %v1714_v59  ;;  %v3579_v5 = vpop.eup %2557  ;;  %v1898_v4 = vmul.f32 0.6931472, %v2556_v52  ;;  %v1716_v23 = vmul.f32 1.442695, %v1661_v9 }
 0x2e2   :  { %2136 = vst [vmem:[#allocation5 + $0x88] sm:$0xff] %v2104_v56  ;;  %v1914_v18 = vadd.f32 1.0, %v3579_v5  ;;  %v1917_v30 = vmul.f32 -0.5, %v3579_v5  ;;  %v1920_v47 = vand.u32 2147483647, %v3579_v5  ;;  %v1594_v52 = vmax.f32 %v3535_v62, 0.0 }
 0x2e3   :  { %v2306_v8 = vpop.f32.mrb[48].mxu1  ;;  %v3584_v16 = vpop.eup %2559  ;;  %v1904_v21 = vsel %vm1903_vm4, %v1901_v58, %v1898_v4 }
 0x2e4   :  { %v2307_v19 = vpop.f32.mrb[49].mxu1  ;;  %v2562_v54 = vpop.eup %2561  ;;  %v2040_v57 = vadd.f32 %v1904_v21, %v1592_v14  ;;  %2569 = vlog2.f32 %v1914_v18  ;;  %v1923_v6 = vadd.f32 1.0, %v3584_v16  ;;  %v1918_v42 = vadd.f32 1.0, %v1917_v30 }
 0x2e5   :  { %v2308_v22 = vadd.f32 %v2307_v19, %v2306_v8  ;;  %v2309_v15 = vpop.f32.mrb[50].mxu1  ;;  %v1907_v17 = vmul.f32 0.6931472, %v2562_v54  ;;  %2571 = vpow2.f32 %v1716_v23  ;;  %v2564_v34 = vpop.eup %2563  ;;  %v1926_v35 = vmul.f32 -0.5, %v3584_v16 }
 0x2e6   :  { %v2310_v20 = vpop.f32.mrb[51].mxu1  ;;  %v2072_v25 = vadd.f32 1e-09, %v2040_v57  ;;  %2573 = vlog2.f32 %v1923_v6  ;;  %v2566_v38 = vpop.eup %2565  ;;  %v1929_v44 = vand.u32 2147483647, %v3584_v16  ;;  %v1919_v46 = vmul.f32 %v3579_v5, %v1918_v42 }
 0x2e7   :  { %v3590_v24 = vadd.f32 %v3569_v40, %v2308_v22  ;;  %v1913_v36 = vsel %vm1912_vm5, %v1910_v28, %v1907_v17  ;;  %v2311_v29 = vadd.f32 %v2310_v20, %v2309_v15  ;;  %2575 = vtanh.f32 %v3535_v62 }
 0x2e8   :  { %v2105_v63 = vsel %vm2086_vm2, %v2564_v34, %v2072_v25  ;;  %v2041_v1 = vadd.f32 %v1913_v36, %v1593_v27  ;;  %2577 = vtanh.f32 %v3541_v53  ;;  %v1927_v31 = vadd.f32 1.0, %v1926_v35 }
 0x2e9   :  { %2137 = vst [vmem:[#allocation5 + $0x90] sm:$0xff] %v2105_v63  ;;  %v1630_v39 = vand.u32 2147483647, %v3590_v24  ;;  %v3605_v61 = vadd.f32 %v3569_v40, %v2311_v29  ;;  %vm1921_vm6 = vcmp.lt.f32.partialorder %v1920_v47, 0.0004427343  ;;  %v1595_v18 = vmax.f32 %v3541_v53, 0.0 }
 0x2ea   :  { %v2073_v32 = vadd.f32 1e-09, %v2041_v1  ;;  %v1928_v8 = vmul.f32 %v3584_v16, %v1927_v31  ;;  %vm1930_vm7 = vcmp.lt.f32.partialorder %v1929_v44, 0.0004427343  ;;  %v1596_v25 = vmax.f32 %v3557_v41, 0.0 }
 0x2eb   :  { %v3595_v2 = vpop.eup %2567  ;;  %v1662_v10 = vsub.f32 0.0, %v1630_v39  ;;  %v1631_v33 = vand.u32 2147483647, %v3605_v61 }
 0x2ec   :  { %v1932_v43 = vadd.f32 1.0, %v3595_v2  ;;  %v2106_v26 = vsel %vm2086_vm2, %v2566_v38, %v2073_v32  ;;  %v1935_v11 = vmul.f32 -0.5, %v3595_v2  ;;  %v1938_v54 = vand.u32 2147483647, %v3595_v2 }
 0x2ed   :  { %v2312_v45 = vpop.f32.mrb[52].mxu1  ;;  %2138 = vst [vmem:[#allocation5 + $0x98] sm:$0xff] %v2106_v26  ;;  %v1718_v48 = vmul.f32 1.442695, %v1662_v10  ;;  %v1663_v56 = vsub.f32 0.0, %v1631_v33 }
 0x2ee   :  { %v2313_v49 = vpop.f32.mrb[53].mxu1  ;;  %2579 = vlog2.f32 %v1932_v43  ;;  %v2570_v50 = vpop.eup %2569  ;;  %v1936_v62 = vadd.f32 1.0, %v1935_v11  ;;  %vm1939_vm8 = vcmp.lt.f32.partialorder %v1938_v54, 0.0004427343 }
 0x2ef   :  { %v2315_v0 = vpop.f32.mrb[54].mxu1  ;;  %v2314_v12 = vadd.f32 %v2313_v49, %v2312_v45  ;;  %v1916_v13 = vmul.f32 0.6931472, %v2570_v50  ;;  %2581 = vpow2.f32 %v1718_v48  ;;  %v3611_v60 = vpop.eup %2571  ;;  %v1720_v14 = vmul.f32 1.442695, %v1663_v56 }
 0x2f0   :  { %v2316_v51 = vpop.f32.mrb[55].mxu1  ;;  %v2574_v5 = vpop.eup %2573  ;;  %2583 = vtanh.f32 %v3557_v41  ;;  %v1941_v58 = vadd.f32 1.0, %v3611_v60  ;;  %v1944_v53 = vmul.f32 -0.5, %v3611_v60  ;;  %v1937_v34 = vmul.f32 %v3595_v2, %v1936_v62 }
 0x2f1   :  { %v2317_v59 = vadd.f32 %v2316_v51, %v2315_v0  ;;  %v3615_v3 = vadd.f32 %v3569_v40, %v2314_v12  ;;  %v1922_v4 = vsel %vm1921_vm6, %v1919_v46, %v1916_v13  ;;  %v1925_v9 = vmul.f32 0.6931472, %v2574_v5  ;;  %v2576_v22 = vpop.eup %2575 }
 0x2f2   :  { %v2042_v7 = vadd.f32 %v1922_v4, %v1594_v52  ;;  %2585 = vlog2.f32 %v1941_v58  ;;  %v2578_v27 = vpop.eup %2577  ;;  %v1945_v32 = vadd.f32 1.0, %v1944_v53  ;;  %v1947_v42 = vand.u32 2147483647, %v3611_v60 }
 0x2f3   :  { %v1931_v21 = vsel %vm1930_vm7, %v1928_v8, %v1925_v9  ;;  %2587 = vpow2.f32 %v1720_v14  ;;  %v1632_v23 = vand.u32 2147483647, %v3615_v3  ;;  %v3624_v57 = vadd.f32 %v3569_v40, %v2317_v59 }
 0x2f4   :  { %v2074_v19 = vadd.f32 1e-09, %v2042_v7  ;;  %v2043_v15 = vadd.f32 %v1931_v21, %v1595_v18  ;;  %2589 = vtanh.f32 %v3572_v55  ;;  %v1946_v31 = vmul.f32 %v3611_v60, %v1945_v32 }
 0x2f5   :  { %v1664_v20 = vsub.f32 0.0, %v1632_v23  ;;  %v1633_v6 = vand.u32 2147483647, %v3624_v57  ;;  %v1597_v51 = vmax.f32 %v3572_v55, 0.0  ;;  %vm1948_vm9 = vcmp.lt.f32.partialorder %v1947_v42, 0.0004427343 }
 0x2f6   :  { %v2107_v16 = vsel %vm2086_vm2, %v2576_v22, %v2074_v19  ;;  %v2075_v28 = vadd.f32 1e-09, %v2043_v15  ;;  %v1598_v15 = vmax.f32 %v3590_v24, 0.0 }
 0x2f7   :  { %2139 = vst [vmem:[#allocation5 + $0xa0] sm:$0xff] %v2107_v16  ;;  %v1722_v36 = vmul.f32 1.442695, %v1664_v20  ;;  %v1665_v38 = vsub.f32 0.0, %v1633_v6 }
 0x2f8   :  { %v2580_v17 = vpop.eup %2579  ;;  %v2108_v1 = vsel %vm2086_vm2, %v2578_v27, %v2075_v28 }
 0x2f9   :  { %v1934_v30 = vmul.f32 0.6931472, %v2580_v17  ;;  %v3632_v63 = vpop.eup %2581  ;;  %2140 = vst [vmem:[#allocation5 + $0xa8] sm:$0xff] %v2108_v1  ;;  %2591 = vpow2.f32 %v1722_v36  ;;  %v1724_v10 = vmul.f32 1.442695, %v1665_v38 }
 0x2fa   :  { %v1950_v41 = vadd.f32 1.0, %v3632_v63  ;;  %v2584_v2 = vpop.eup %2583  ;;  %v1953_v33 = vmul.f32 -0.5, %v3632_v63  ;;  %v1956_v7 = vand.u32 2147483647, %v3632_v63 }
 0x2fb   :  { %v2318_v39 = vpop.f32.mrb[56].mxu1  ;;  %v1940_v29 = vsel %vm1939_vm8, %v1937_v34, %v1934_v30 }
 0x2fc   :  { %v2319_v35 = vpop.f32.mrb[57].mxu1  ;;  %v2044_v43 = vadd.f32 %v1940_v29, %v1596_v25  ;;  %2593 = vlog2.f32 %v1950_v41  ;;  %v2586_v49 = vpop.eup %2585  ;;  %v1954_v56 = vadd.f32 1.0, %v1953_v33  ;;  %vm1957_vm10 = vcmp.lt.f32.partialorder %v1956_v7, 0.0004427343 }
 0x2fd   :  { %v2320_v45 = vadd.f32 %v2319_v35, %v2318_v39  ;;  %v2321_v26 = vpop.f32.mrb[58].mxu1  ;;  %2595 = vpow2.f32 %v1724_v10  ;;  %v2588_v50 = vpop.eup %2587  ;;  %v1943_v46 = vmul.f32 0.6931472, %v2586_v49 }
 0x2fe   :  { %v2322_v47 = vpop.f32.mrb[59].mxu1  ;;  %v2076_v44 = vadd.f32 1e-09, %v2044_v43  ;;  %v1959_v13 = vadd.f32 1.0, %v2588_v50  ;;  %v2590_v60 = vpop.eup %2589  ;;  %v1962_v9 = vmul.f32 -0.5, %v2588_v50  ;;  %v1955_v54 = vmul.f32 %v3632_v63, %v1954_v56 }
 0x2ff   :  { %v3640_v48 = vadd.f32 %v3569_v40, %v2320_v45  ;;  %v2323_v0 = vadd.f32 %v2322_v47, %v2321_v26  ;;  %v1949_v11 = vsel %vm1948_vm9, %v1946_v31, %v1943_v46  ;;  %v1965_v36 = vand.u32 2147483647, %v2588_v50 }
 0x300   :  { %v2109_v12 = vsel %vm2086_vm2, %v2584_v2, %v2076_v44  ;;  %v2045_v52 = vadd.f32 %v1949_v11, %v1597_v51  ;;  %2597 = vlog2.f32 %v1959_v13  ;;  %v1963_v25 = vadd.f32 1.0, %v1962_v9 }
 0x301   :  { %2141 = vst [vmem:[#allocation5 + $0xb0] sm:$0xff] %v2109_v12  ;;  %v1634_v59 = vand.u32 2147483647, %v3640_v48  ;;  %v3649_v4 = vadd.f32 %v3569_v40, %v2323_v0  ;;  %2599 = vtanh.f32 %v3590_v24  ;;  %v1599_v2 = vmax.f32 %v3605_v61, 0.0 }
 0x302   :  { %v2077_v58 = vadd.f32 1e-09, %v2045_v52  ;;  %2601 = vtanh.f32 %v3605_v61  ;;  %v1964_v42 = vmul.f32 %v2588_v50, %v1963_v25  ;;  %vm1966_vm11 = vcmp.lt.f32.partialorder %v1965_v36, 0.0004427343 }
 0x303   :  { %v1666_v5 = vsub.f32 0.0, %v1634_v59  ;;  %v1635_v14 = vand.u32 2147483647, %v3649_v4  ;;  %v3654_v62 = vpop.eup %2591 }
 0x304   :  { %v2110_v19 = vsel %vm2086_vm2, %v2590_v60, %v2077_v58  ;;  %v1968_v27 = vadd.f32 1.0, %v3654_v62  ;;  %v1971_v38 = vmul.f32 -0.5, %v3654_v62  ;;  %v1974_v46 = vand.u32 2147483647, %v3654_v62 }
 0x305   :  { %v2324_v55 = vpop.f32.mrb[60].mxu1  ;;  %v1726_v8 = vmul.f32 1.442695, %v1666_v5  ;;  %2142 = vst [vmem:[#allocation5 + $0xb8] sm:$0xff] %v2110_v19  ;;  %v1667_v17 = vsub.f32 0.0, %v1635_v14  ;;  %v1600_v5 = vmax.f32 %v3615_v3, 0.0 }
 0x306   :  { %v2325_v18 = vpop.f32.mrb[61].mxu1  ;;  %v2594_v22 = vpop.eup %2593  ;;  %v1972_v44 = vadd.f32 1.0, %v1971_v38  ;;  %vm1975_vm12 = vcmp.lt.f32.partialorder %v1974_v46, 0.0004427343 }
 0x307   :  { %v2326_v21 = vadd.f32 %v2325_v18, %v2324_v55  ;;  %v2327_v23 = vpop.f32.mrb[62].mxu1  ;;  %2603 = vpow2.f32 %v1726_v8  ;;  %v2596_v53 = vpop.eup %2595  ;;  %v1952_v20 = vmul.f32 0.6931472, %v2594_v22  ;;  %v1728_v24 = vmul.f32 1.442695, %v1667_v17 }
 0x308   :  { %v2328_v16 = vpop.f32.mrb[63].mxu1  ;;  %2605 = vlog2.f32 %v1968_v27  ;;  %v1977_v30 = vadd.f32 1.0, %v2596_v53  ;;  %v1980_v43 = vmul.f32 -0.5, %v2596_v53  ;;  %v1983_v51 = vand.u32 2147483647, %v2596_v53 }
 0x309   :  { %v3663_v28 = vadd.f32 %v3569_v40, %v2326_v21  ;;  %v2329_v6 = vadd.f32 %v2328_v16, %v2327_v23  ;;  %v1958_v34 = vsel %vm1957_vm10, %v1955_v54, %v1952_v20  ;;  %v1973_v52 = vmul.f32 %v3654_v62, %v1972_v44 }
 0x30a   :  { %v2046_v1 = vadd.f32 %v1958_v34, %v1598_v15  ;;  %2607 = vlog2.f32 %v1977_v30  ;;  %v2598_v63 = vpop.eup %2597  ;;  %v1981_v31 = vadd.f32 1.0, %v1980_v43  ;;  %v1601_v55 = vmax.f32 %v3624_v57, 0.0 }
 0x30b   :  { %2609 = vpow2.f32 %v1728_v24  ;;  %v1636_v39 = vand.u32 2147483647, %v3663_v28  ;;  %v1961_v32 = vmul.f32 0.6931472, %v2598_v63  ;;  %v3668_v41 = vadd.f32 %v3569_v40, %v2329_v6  ;;  %v2600_v35 = vpop.eup %2599 }
 0x30c   :  { %v2078_v29 = vadd.f32 1e-09, %v2046_v1  ;;  %2611 = vtanh.f32 %v3615_v3  ;;  %v2602_v47 = vpop.eup %2601  ;;  %v1982_v8 = vmul.f32 %v2596_v53, %v1981_v31  ;;  %vm1984_vm13 = vcmp.lt.f32.partialorder %v1983_v51, 0.0004427343 }
 0x30d   :  { %v1668_v10 = vsub.f32 0.0, %v1636_v39  ;;  %v1967_v26 = vsel %vm1966_vm11, %v1964_v42, %v1961_v32  ;;  %v1637_v40 = vand.u32 2147483647, %v3668_v41  ;;  %2613 = vtanh.f32 %v3624_v57 }
 0x30e   :  { %v2111_v45 = vsel %vm2086_vm2, %v2600_v35, %v2078_v29  ;;  %v2047_v49 = vadd.f32 %v1967_v26, %v1599_v2  ;;  %v1602_v34 = vmax.f32 %v3640_v48, 0.0  ;;  %v1604_v31 = vmax.f32 %v3663_v28, 0.0 }
 0x30f   :  { %2143 = vst [vmem:[#allocation5 + $0xc0] sm:$0xff] %v2111_v45  ;;  %v1730_v0 = vmul.f32 1.442695, %v1668_v10  ;;  %v1669_v13 = vsub.f32 0.0, %v1637_v40  ;;  %v1603_v10 = vmax.f32 %v3649_v4, 0.0 }
 0x310   :  { %v2079_v61 = vadd.f32 1e-09, %v2047_v49 }
 0x311   :  { %v2604_v50 = vpop.eup %2603  ;;  %2615 = vpow2.f32 %v1730_v0  ;;  %v1732_v60 = vmul.f32 1.442695, %v1669_v13 }
 0x312   :  { %v1986_v33 = vadd.f32 1.0, %v2604_v50  ;;  %v2606_v12 = vpop.eup %2605  ;;  %v2112_v11 = vsel %vm2086_vm2, %v2602_v47, %v2079_v61  ;;  %v1989_v18 = vmul.f32 -0.5, %v2604_v50  ;;  %v1992_v27 = vand.u32 2147483647, %v2604_v50 }
 0x313   :  { %v1970_v59 = vmul.f32 0.6931472, %v2606_v12  ;;  %2144 = vst [vmem:[#allocation5 + $0xc8] sm:$0xff] %v2112_v11 }
 0x314   :  { %2617 = vlog2.f32 %v1986_v33  ;;  %v2608_v56 = vpop.eup %2607  ;;  %v1990_v54 = vadd.f32 1.0, %v1989_v18  ;;  %vm1993_vm14 = vcmp.lt.f32.partialorder %v1992_v27, 0.0004427343 }
 0x315   :  { %v2610_v58 = vpop.eup %2609  ;;  %v1976_v7 = vsel %vm1975_vm12, %v1973_v52, %v1970_v59  ;;  %v1979_v9 = vmul.f32 0.6931472, %v2608_v56  ;;  %2619 = vpow2.f32 %v1732_v60  ;;  %v1605_v60 = vmax.f32 %v3668_v41, 0.0 }
 0x316   :  { %v2048_v14 = vadd.f32 %v1976_v7, %v1600_v5  ;;  %v1995_v19 = vadd.f32 1.0, %v2610_v58  ;;  %v2612_v62 = vpop.eup %2611  ;;  %v1998_v16 = vmul.f32 -0.5, %v2610_v58  ;;  %v1991_v30 = vmul.f32 %v2604_v50, %v1990_v54 }
 0x317   :  { %v1985_v21 = vsel %vm1984_vm13, %v1982_v8, %v1979_v9  ;;  %v2614_v57 = vpop.eup %2613  ;;  %v2001_v1 = vand.u32 2147483647, %v2610_v58 }
 0x318   :  { %v2080_v23 = vadd.f32 1e-09, %v2048_v14  ;;  %v2049_v22 = vadd.f32 %v1985_v21, %v1601_v55  ;;  %2621 = vlog2.f32 %v1995_v19  ;;  %v1999_v36 = vadd.f32 1.0, %v1998_v16 }
 0x319   :  { %2623 = vtanh.f32 %v3640_v48  ;;  %vm2002_vm15 = vcmp.lt.f32.partialorder %v2001_v1, 0.0004427343 }
 0x31a   :  { %v2113_v3 = vsel %vm2086_vm2, %v2612_v62, %v2080_v23  ;;  %v2081_v15 = vadd.f32 1e-09, %v2049_v22  ;;  %2625 = vtanh.f32 %v3649_v4  ;;  %v2000_v2 = vmul.f32 %v2610_v58, %v1999_v36 }
 0x31b   :  { %2145 = vst [vmem:[#allocation5 + $0xd0] sm:$0xff] %v2113_v3  ;;  %v2616_v53 = vpop.eup %2615 }
 0x31c   :  { %v2114_v20 = vsel %vm2086_vm2, %v2614_v57, %v2081_v15  ;;  %v2004_v6 = vadd.f32 1.0, %v2616_v53  ;;  %v2007_v29 = vmul.f32 -0.5, %v2616_v53  ;;  %v2010_v49 = vand.u32 2147483647, %v2616_v53 }
 0x31d   :  { %2146 = vst [vmem:[#allocation5 + $0xd8] sm:$0xff] %v2114_v20 }
 0x31e   :  { %v2618_v17 = vpop.eup %2617  ;;  %2627 = vlog2.f32 %v2004_v6  ;;  %v2008_v47 = vadd.f32 1.0, %v2007_v29  ;;  %vm2011_vm0 = vcmp.lt.f32.partialorder %v2010_v49, 0.0004427343 }
 0x31f   :  { %v1988_v25 = vmul.f32 0.6931472, %v2618_v17  ;;  %v2620_v63 = vpop.eup %2619 }
 0x320   :  { %v2013_v32 = vadd.f32 1.0, %v2620_v63  ;;  %v2016_v44 = vmul.f32 -0.5, %v2620_v63  ;;  %v2009_v61 = vmul.f32 %v2616_v53, %v2008_v47  ;;  %v2019_v51 = vand.u32 2147483647, %v2620_v63 }
 0x321   :  { %v1994_v24 = vsel %vm1993_vm14, %v1991_v30, %v1988_v25 }
 0x322   :  { %v2050_v38 = vadd.f32 %v1994_v24, %v1602_v34  ;;  %v2622_v39 = vpop.eup %2621  ;;  %2629 = vlog2.f32 %v2013_v32  ;;  %v2017_v33 = vadd.f32 1.0, %v2016_v44  ;;  %vm2020_vm1 = vcmp.lt.f32.partialorder %v2019_v51, 0.0004427343 }
 0x323   :  { %v1997_v35 = vmul.f32 0.6931472, %v2622_v39  ;;  %v2624_v43 = vpop.eup %2623  ;;  %2631 = vtanh.f32 %v3663_v28 }
 0x324   :  { %v2082_v42 = vadd.f32 1e-09, %v2050_v38  ;;  %v2626_v0 = vpop.eup %2625  ;;  %2633 = vtanh.f32 %v3668_v41  ;;  %v2018_v56 = vmul.f32 %v2620_v63, %v2017_v33 }
 0x325   :  { %v2003_v45 = vsel %vm2002_vm15, %v2000_v2, %v1997_v35 }
 0x326   :  { %v2115_v48 = vsel %vm2086_vm2, %v2624_v43, %v2082_v42  ;;  %v2051_v26 = vadd.f32 %v2003_v45, %v1603_v10 }
 0x327   :  { %2147 = vst [vmem:[#allocation5 + $0xe0] sm:$0xff] %v2115_v48 }
 0x328   :  { %v2083_v40 = vadd.f32 1e-09, %v2051_v26  ;;  %v2628_v50 = vpop.eup %2627 }
 0x329   :  { %v2006_v4 = vmul.f32 0.6931472, %v2628_v50 }
 0x32a   :  { %v2116_v46 = vsel %vm2086_vm2, %v2626_v0, %v2083_v40 }
 0x32b   :  { %2148 = vst [vmem:[#allocation5 + $0xe8] sm:$0xff] %v2116_v46  ;;  %v2012_v12 = vsel %vm2011_vm0, %v2009_v61, %v2006_v4 }
 0x32c   :  { %v2052_v13 = vadd.f32 %v2012_v12, %v1604_v31  ;;  %v2630_v11 = vpop.eup %2629 }
 0x32d   :  { %v2015_v52 = vmul.f32 0.6931472, %v2630_v11  ;;  %v2632_v5 = vpop.eup %2631 }
 0x32e   :  { %v2084_v59 = vadd.f32 1e-09, %v2052_v13  ;;  %v2634_v9 = vpop.eup %2633 }
 0x32f   :  { %v2021_v7 = vsel %vm2020_vm1, %v2018_v56, %v2015_v52 }
 0x330   :  { %v2117_v58 = vsel %vm2086_vm2, %v2632_v5, %v2084_v59  ;;  %v2053_v28 = vadd.f32 %v2021_v7, %v1605_v60 }
 0x331   :  { %2149 = vst [vmem:[#allocation5 + $0xf0] sm:$0xff] %v2117_v58 }
 0x332   :  { %v2085_v55 = vadd.f32 1e-09, %v2053_v28 }
 0x334   :  { %v2118_v8 = vsel %vm2086_vm2, %v2634_v9, %v2085_v55 }
 0x335   :  { %2150 = vst [vmem:[#allocation5 + $0xf8] sm:$0xff] %v2118_v8 }
 0x336   :  { %2669 = shalt.err (!%p2666_p12)
}
 0x337   :  { %s2670_s9 = scalar_lea.hbm %s3721_s7, 4096 }
 0x338   :  { %p2671_p13 = scmp.ne.s32.totalorder %s3721_s7, %s2670_s9  ;;  %p2674_p0 = scmp.lt.u32.totalorder %s2670_s9, %s3721_s7 }
 0x33a   :  { %p2676_p1 = pnand %p2674_p0, %p2671_p13 }
 0x33c   :  { %2679 = shalt.err (!%p2676_p1)
}
 0x33d   :  { %s2690_s14 = smov 128   ;;  %s2691_s15 = smov 8  }
 0x33e   :  { %2162 = dma.vmem_to_hbm [thread:$0]  %s2157_s28, 4096, %s3721_s7, [#allocation4], %s2690_s14, %s2690_s14, %s2691_s15  }
 0x33f   :  { %2682 = dma.done.wait [#allocation4], 4096  }
 0x340   :  { %2683 = vsyncadd [#allocation4], 4294963200 }
 0x341   :  { %2166 = vsyncpa [#allocation3], 1 }
 0x342   :  { %2167 = vsyncpa [#allocation4], 1 }

</bundles_post_ra>
